<compile_context>
chip_gen: v7x
topology: tpu7x:2x2x1
jax: 0.10.0
libtpu: 0.0.40
codegen_flags: <defaults>
</compile_context>

<pallas_src>
import functools

import jax
import jax.numpy as jnp
from jax.experimental import pallas as pl
from jax.experimental.pallas import tpu as pltpu

_NEG = -1e30  # padding-logit bias: exp underflows to 0, max unaffected -> exact


def _round_up(x, m):
    return ((x + m - 1) // m) * m


def _lstm_fc_logsoftmax_kernel(x_ref, h0_ref, c0_ref, wih_ref, whh_ref, b_ref,
                               wfc_ref, bfc_ref, out_ref, xw_scr, *,
                               hidden_p, seq_len, batch_tile,
                               slot_offsets, slot_widths, fuse_heads, unrolled):
    Hp = hidden_p
    T = seq_len
    TB = batch_tile
    I = x_ref.shape[-1]

    # ---- hoisted input projection (off the serial critical path) ------------
    # x is time-major (T, TB, I): collapsing leading axes is free; one big
    # bf16 MXU matmul (f32 accumulate), bias folded in, ONE dense scratch store.
    x2d = x_ref[...].reshape(T * TB, I)                             # bf16
    xw = jnp.dot(x2d, wih_ref[...],
                 preferred_element_type=jnp.float32) + b_ref[...]   # (T*TB, 4Hp) f32
    xw_scr[...] = xw.reshape(T, TB, 4 * Hp)

    # ---- recurrence -----------------------------------------------------------
    # gate slot order is (i, f, o, g): one sigmoid over the first 3*Hp lanes,
    # one tanh over the last Hp lanes per step. W_hh stays in VMEM and is read
    # from its ref next to every dot (not hoisted into vregs).
    def step(t, carry):
        h, c = carry
        gates = xw_scr[t] + jnp.dot(h, whh_ref[...],
                                    preferred_element_type=jnp.float32)
        sig = jax.nn.sigmoid(gates[:, :3 * Hp])
        i_g = sig[:, 0 * Hp:1 * Hp]
        f_g = sig[:, 1 * Hp:2 * Hp]
        o_g = sig[:, 2 * Hp:3 * Hp]
        g_g = jnp.tanh(gates[:, 3 * Hp:4 * Hp])
        c = f_g * c + i_g * g_g
        h = o_g * jnp.tanh(c)
        return h, c

    h = h0_ref[...]
    c = c0_ref[...]
    if unrolled:                      # short sequences: full static unroll
        for t in range(T):
            h, c = step(t, (h, c))
    else:                             # long sequences: bounded live ranges
        h, c = jax.lax.fori_loop(0, T, step, (h, c), unroll=8)

    # ---- dropout(p=0.2) -> inference identity; FC + per-head log-softmax -----
    logits = jnp.dot(h, wfc_ref[...],
                     preferred_element_type=jnp.float32) + bfc_ref[...]  # (TB, OW) f32

    def log_softmax(v):
        m = jnp.max(v, axis=-1, keepdims=True)
        s = v - m
        return s - jnp.log(jnp.sum(jnp.exp(s), axis=-1, keepdims=True))

    if fuse_heads:
        # every head slot is exactly one 128-lane tile -> one fused pass
        n_heads = len(slot_widths)
        ls = log_softmax(logits.reshape(TB * n_heads, 128))
        out_ref[...] = ls.reshape(TB, n_heads * 128)
    else:
        for off, w in zip(slot_offsets, slot_widths):
            out_ref[:, off:off + w] = log_softmax(logits[:, off:off + w])


@functools.partial(jax.jit, static_argnames=("batch_tile",))
def lstm_network_forward(x, h0, c0, w_ih, w_hh, b_ih, b_hh, w_fc, b_fc, *,
                         batch_tile=None):
    """x: (B, T, I) batch-first; h0/c0: (B, H); PyTorch-shaped LSTM/Linear weights."""
    f32 = jnp.float32
    bf16 = jnp.bfloat16
    B, T, I = x.shape
    H = h0.shape[-1]
    O = w_fc.shape[0]
    assert O > 89 + 128, "out_size must exceed 217"

    sizes = (89, 128, O - 217)                       # the three softmax heads
    Hp = _round_up(H, 128)                           # pad hidden to lane tile
    slots = tuple(_round_up(s, 128) for s in sizes)
    offs = (0, slots[0], slots[0] + slots[1])
    OW = slots[0] + slots[1] + slots[2]              # lane-dense output width
    fuse_heads = all(s == 128 for s in slots)

    # ---- batch tile: fill the MXU rows; keep >=2 grid tiles when B allows ----
    # (so dimension_semantics=("parallel",) actually uses both v7x TensorCores)
    if batch_tile is None:
        if B <= 16:
            TB = _round_up(B, 16)
        else:
            TB = min(128, _round_up((B + 1) // 2, 16))
    else:
        TB = batch_tile
    B_pad = _round_up(B, TB)
    nb = B_pad // TB

    # ---- zero-padded, pre-transposed weights ---------------------------------
    # time-major bf16 x (halves DMA / VMEM for the hoisted projection)
    x_tm = jnp.transpose(x, (1, 0, 2)).astype(bf16)                   # (T, B, I)
    x_p = jnp.zeros((T, B_pad, I), bf16).at[:, :B, :].set(x_tm)
    h0_p = jnp.zeros((B_pad, Hp), f32).at[:B, :H].set(h0.astype(f32))
    c0_p = jnp.zeros((B_pad, Hp), f32).at[:B, :H].set(c0.astype(f32))

    wih_t = jnp.transpose(w_ih).astype(f32)          # (I, 4H)  PyTorch (i,f,g,o)
    whh_t = jnp.transpose(w_hh).astype(f32)          # (H, 4H)
    bias = (b_ih + b_hh).astype(f32)                 # (4H,)

    # kernel gate slot order (i, f, o, g); padded columns stay exactly zero.
    gate_order = (0, 1, 3, 2)                        # source gate for slot k
    wih_p = jnp.zeros((I, 4 * Hp), f32)
    whh_p = jnp.zeros((Hp, 4 * Hp), f32)
    b_p = jnp.zeros((1, 4 * Hp), f32)
    for k, g in enumerate(gate_order):
        wih_p = wih_p.at[:, k * Hp:k * Hp + H].set(wih_t[:, g * H:(g + 1) * H])
        whh_p = whh_p.at[:H, k * Hp:k * Hp + H].set(whh_t[:, g * H:(g + 1) * H])
        b_p = b_p.at[0, k * Hp:k * Hp + H].set(bias[g * H:(g + 1) * H])
    wih_p = wih_p.astype(bf16)                       # bf16 weights, f32 accumulate

    wfc_t = jnp.transpose(w_fc).astype(f32)          # (H, O)
    wfc_p = jnp.zeros((Hp, OW), f32)
    bfc_p = jnp.full((1, OW), _NEG, f32)
    col = 0
    for k in range(3):
        wfc_p = wfc_p.at[:H, offs[k]:offs[k] + sizes[k]].set(
            wfc_t[:, col:col + sizes[k]])
        bfc_p = bfc_p.at[0, offs[k]:offs[k] + sizes[k]].set(
            b_fc[col:col + sizes[k]].astype(f32))
        col += sizes[k]

    # ---- VMEM budget (double-buffered inputs + scratch), with headroom -------
    bytes_est = (
        2 * (T * TB * I * 2)             # x block (bf16)
        + T * TB * 4 * Hp * 4            # xw scratch (f32)
        + 2 * (I * 4 * Hp * 2)           # W_ih (bf16)
        + 2 * (Hp * 4 * Hp * 4)          # W_hh (f32)
        + 2 * (Hp * OW * 4)              # W_fc
        + 2 * (OW * 4) + 2 * (4 * Hp * 4)
        + 4 * (TB * Hp * 4)              # h0, c0
        + 2 * (TB * OW * 4)              # out
    )
    vmem_limit = int(min(max(bytes_est * 5 // 4, 32 * 2**20), 100 * 2**20))

    kernel = functools.partial(
        _lstm_fc_logsoftmax_kernel,
        hidden_p=Hp, seq_len=T, batch_tile=TB,
        slot_offsets=offs, slot_widths=slots, fuse_heads=fuse_heads,
        unrolled=(T <= 32))

    grid_spec = pltpu.PrefetchScalarGridSpec(
        num_scalar_prefetch=0,
        grid=(nb,),
        in_specs=[
            pl.BlockSpec((T, TB, I), lambda bi: (0, bi, 0)),     # x (time-major)
            pl.BlockSpec((TB, Hp), lambda bi: (bi, 0)),          # h0
            pl.BlockSpec((TB, Hp), lambda bi: (bi, 0)),          # c0
            pl.BlockSpec((I, 4 * Hp), lambda bi: (0, 0)),        # W_ih^T (bf16, padded)
            pl.BlockSpec((Hp, 4 * Hp), lambda bi: (0, 0)),       # W_hh^T (f32, padded)
            pl.BlockSpec((1, 4 * Hp), lambda bi: (0, 0)),        # gate bias
            pl.BlockSpec((Hp, OW), lambda bi: (0, 0)),           # W_fc^T (padded)
            pl.BlockSpec((1, OW), lambda bi: (0, 0)),            # fc bias (+ -1e30 pad)
        ],
        out_specs=pl.BlockSpec((TB, OW), lambda bi: (bi, 0)),
        scratch_shapes=[pltpu.VMEM((T, TB, 4 * Hp), jnp.float32)],  # xW scratch
    )

    slab = pl.pallas_call(
        kernel,
        out_shape=jax.ShapeDtypeStruct((B_pad, OW), jnp.float32),
        grid_spec=grid_spec,
        compiler_params=pltpu.CompilerParams(
            dimension_semantics=("parallel",),
            vmem_limit_bytes=vmem_limit),
    )(x_p, h0_p, c0_p, wih_p, whh_p, b_p, wfc_p, bfc_p)

    xs = slab[:B, offs[0]:offs[0] + sizes[0]]
    ys = slab[:B, offs[1]:offs[1] + sizes[1]]
    zs = slab[:B, offs[2]:offs[2] + sizes[2]]
    return xs, ys, zs


def _reference(x, h0, c0, w_ih, w_hh, b_ih, b_hh, w_fc, b_fc):
    """Pure-JAX reference mirroring torch.nn.LSTM + Linear + LogSoftmax (f32)."""
    B, T, I = x.shape
    H = h0.shape[-1]
    h, c = h0, c0
    for t in range(T):
        gates = x[:, t, :] @ w_ih.T + b_ih + h @ w_hh.T + b_hh
        i_g = jax.nn.sigmoid(gates[:, 0 * H:1 * H])
        f_g = jax.nn.sigmoid(gates[:, 1 * H:2 * H])
        g_g = jnp.tanh(gates[:, 2 * H:3 * H])
        o_g = jax.nn.sigmoid(gates[:, 3 * H:4 * H])
        c = f_g * c + i_g * g_g
        h = o_g * jnp.tanh(c)
    out = h @ w_fc.T + b_fc
    ls = jax.nn.log_softmax
    return ls(out[:, :89], axis=1), ls(out[:, 89:217], axis=1), ls(out[:, 217:], axis=1)


if __name__ == "__main__":
    # Small shapes consistent with the module's forward (batch_size=30 in file).
    B, T, I, H = 30, 8, 16, 32
    O = 89 + 128 + 39            # out_size must exceed 89+128; third head = 39

    key = jax.random.PRNGKey(0)
    ks = jax.random.split(key, 7)
    bound = 1.0 / jnp.sqrt(H)

    w_ih = jax.random.uniform(ks[0], (4 * H, I), jnp.float32, -bound, bound)
    w_hh = jax.random.uniform(ks[1], (4 * H, H), jnp.float32, -bound, bound)
    b_ih = jax.random.uniform(ks[2], (4 * H,), jnp.float32, -bound, bound)
    b_hh = jax.random.uniform(ks[3], (4 * H,), jnp.float32, -bound, bound)
    w_fc = jax.random.uniform(ks[4], (O, H), jnp.float32, -bound, bound)
    b_fc = jax.random.uniform(ks[5], (O,), jnp.float32, -bound, bound)

    x = jax.random.normal(ks[6], (B, T, I), jnp.float32)
    h0 = jnp.zeros((B, H), jnp.float32)   # initHidden -> zeros
    c0 = jnp.zeros((B, H), jnp.float32)

    xs, ys, zs = lstm_network_forward(x, h0, c0, w_ih, w_hh, b_ih, b_hh, w_fc, b_fc)
    jax.block_until_ready((xs, ys, zs))

    # Reference uses the same bf16-rounded x / W_ih the kernel feeds the MXU
    # (the kernel accumulates in f32, so this matches tightly); everything
    # else (W_hh, recurrence, FC, log-softmax) is f32 in both.
    x_q = x.astype(jnp.bfloat16).astype(jnp.float32)
    w_ih_q = w_ih.astype(jnp.bfloat16).astype(jnp.float32)
    rx, ry, rz = _reference(x_q, h0, c0, w_ih_q, w_hh, b_ih, b_hh, w_fc, b_fc)
    assert jnp.allclose(xs, rx, atol=2e-3), "head x mismatch"
    assert jnp.allclose(ys, ry, atol=2e-3), "head y mismatch"
    assert jnp.allclose(zs, rz, atol=2e-3), "head z mismatch"

    print("KERNEL_OK")
</pallas_src>

<mosaic_0001>
module attributes {stable_mosaic.version = 11 : i64} {
  func.func @_lstm_fc_logsoftmax_kernel(%arg0: i32, %arg1: memref<8x16x16xbf16, #tpu.memory_space<vmem>>, %arg2: memref<16x128xf32, #tpu.memory_space<vmem>>, %arg3: memref<16x128xf32, #tpu.memory_space<vmem>>, %arg4: memref<16x512xbf16, #tpu.memory_space<vmem>>, %arg5: memref<128x512xf32, #tpu.memory_space<vmem>>, %arg6: memref<1x512xf32, #tpu.memory_space<vmem>>, %arg7: memref<128x384xf32, #tpu.memory_space<vmem>>, %arg8: memref<1x384xf32, #tpu.memory_space<vmem>>, %arg9: memref<16x384xf32, #tpu.memory_space<vmem>>, %arg10: memref<8x16x512xf32, #tpu.memory_space<vmem>>) attributes {dimension_semantics = [#tpu.dimension_semantics<parallel>], iteration_bounds = array<i64: 2>, scalar_prefetch = 0 : i64, scratch_operands = 1 : i64, tpu.core_type = #tpu.core_type<tc>, window_params = [{transform_indices = @transform_0, window_bounds = array<i64: 8, 16, 16>}, {transform_indices = @transform_1, window_bounds = array<i64: 16, 128>}, {transform_indices = @transform_2, window_bounds = array<i64: 16, 128>}, {pipeline_mode = #tpu.pipeline_mode<synchronous>, transform_indices = @transform_3, window_bounds = array<i64: 16, 512>}, {pipeline_mode = #tpu.pipeline_mode<synchronous>, transform_indices = @transform_4, window_bounds = array<i64: 128, 512>}, {pipeline_mode = #tpu.pipeline_mode<synchronous>, transform_indices = @transform_5, window_bounds = array<i64: 1, 512>}, {pipeline_mode = #tpu.pipeline_mode<synchronous>, transform_indices = @transform_6, window_bounds = array<i64: 128, 384>}, {pipeline_mode = #tpu.pipeline_mode<synchronous>, transform_indices = @transform_7, window_bounds = array<i64: 1, 384>}, {transform_indices = @transform_8, window_bounds = array<i64: 16, 384>}]} {
    %c0 = arith.constant 0 : index
    %c0_0 = arith.constant 0 : index
    %c0_1 = arith.constant 0 : index
    %0 = vector.load %arg1[%c0, %c0_0, %c0_1] : memref<8x16x16xbf16, #tpu.memory_space<vmem>>, vector<8x16x16xbf16>
    %1 = vector.shape_cast %0 : vector<8x16x16xbf16> to vector<128x16xbf16>
    %c0_2 = arith.constant 0 : index
    %c0_3 = arith.constant 0 : index
    %2 = vector.load %arg4[%c0_2, %c0_3] : memref<16x512xbf16, #tpu.memory_space<vmem>>, vector<16x512xbf16>
    %cst = arith.constant dense<0.000000e+00> : vector<128x512xf32>
    %3 = tpu.matmul %1, %2, %cst {dimension_numbers = #tpu.dot_dimension_numbers<[1], [0], [0], [1], [0, 0, 1, 1], [], []>} : vector<128x16xbf16>, vector<16x512xbf16>, vector<128x512xf32> -> vector<128x512xf32>
    %c0_4 = arith.constant 0 : index
    %c0_5 = arith.constant 0 : index
    %4 = vector.load %arg6[%c0_4, %c0_5] : memref<1x512xf32, #tpu.memory_space<vmem>>, vector<1x512xf32>
    %5 = vector.broadcast %4 : vector<1x512xf32> to vector<128x512xf32>
    %6 = arith.addf %3, %5 : vector<128x512xf32>
    %7 = vector.shape_cast %6 : vector<128x512xf32> to vector<8x16x512xf32>
    %c0_6 = arith.constant 0 : index
    %c0_7 = arith.constant 0 : index
    %c0_8 = arith.constant 0 : index
    %8 = vector.load %arg10[%c0_6, %c0_7, %c0_8] : memref<8x16x512xf32, #tpu.memory_space<vmem>>, vector<8x16x512xf32>
    tpu.vector_store %arg10[%c0_6, %c0_7, %c0_8], %7 {strides = array<i32>} : memref<8x16x512xf32, #tpu.memory_space<vmem>>, vector<8x16x512xf32>,
    %c0_9 = arith.constant 0 : index
    %c0_10 = arith.constant 0 : index
    %9 = vector.load %arg2[%c0_9, %c0_10] : memref<16x128xf32, #tpu.memory_space<vmem>>, vector<16x128xf32>
    %c0_11 = arith.constant 0 : index
    %c0_12 = arith.constant 0 : index
    %10 = vector.load %arg3[%c0_11, %c0_12] : memref<16x128xf32, #tpu.memory_space<vmem>>, vector<16x128xf32>
    %c0_13 = arith.constant 0 : index
    %c0_14 = arith.constant 0 : index
    %c0_15 = arith.constant 0 : index
    %11 = vector.load %arg10[%c0_13, %c0_14, %c0_15] : memref<8x16x512xf32, #tpu.memory_space<vmem>>, vector<1x16x512xf32>
    %12 = vector.shape_cast %11 : vector<1x16x512xf32> to vector<16x512xf32>
    %c0_16 = arith.constant 0 : index
    %c0_17 = arith.constant 0 : index
    %13 = vector.load %arg5[%c0_16, %c0_17] : memref<128x512xf32, #tpu.memory_space<vmem>>, vector<128x512xf32>
    %cst_18 = arith.constant dense<0.000000e+00> : vector<16x512xf32>
    %14 = tpu.matmul %9, %13, %cst_18 {dimension_numbers = #tpu.dot_dimension_numbers<[1], [0], [0], [1], [0, 0, 1, 1], [], []>} : vector<16x128xf32>, vector<128x512xf32>, vector<16x512xf32> -> vector<16x512xf32>
    %15 = arith.addf %12, %14 : vector<16x512xf32>
    %16 = vector.extract_strided_slice %15 {offsets = [0, 0], sizes = [16, 384], strides = [1, 1]} : vector<16x512xf32> to vector<16x384xf32>
    %17 = arith.negf %16 : vector<16x384xf32>
    %18 = math.exp %17 : vector<16x384xf32>
    %cst_19 = arith.constant 1.000000e+00 : f32
    %19 = vector.broadcast %cst_19 : f32 to vector<16x384xf32>
    %20 = arith.addf %19, %18 : vector<16x384xf32>
    %21 = arith.divf %19, %20 : vector<16x384xf32>
    %22 = vector.extract_strided_slice %21 {offsets = [0, 0], sizes = [16, 128], strides = [1, 1]} : vector<16x384xf32> to vector<16x128xf32>
    %23 = vector.extract_strided_slice %21 {offsets = [0, 128], sizes = [16, 128], strides = [1, 1]} : vector<16x384xf32> to vector<16x128xf32>
    %24 = vector.extract_strided_slice %21 {offsets = [0, 256], sizes = [16, 128], strides = [1, 1]} : vector<16x384xf32> to vector<16x128xf32>
    %25 = vector.extract_strided_slice %15 {offsets = [0, 384], sizes = [16, 128], strides = [1, 1]} : vector<16x512xf32> to vector<16x128xf32>
    %26 = math.tanh %25 : vector<16x128xf32>
    %27 = arith.mulf %23, %10 : vector<16x128xf32>
    %28 = arith.mulf %22, %26 : vector<16x128xf32>
    %29 = arith.addf %27, %28 : vector<16x128xf32>
    %30 = math.tanh %29 : vector<16x128xf32>
    %31 = arith.mulf %24, %30 : vector<16x128xf32>
    %c1 = arith.constant 1 : index
    %c0_20 = arith.constant 0 : index
    %c0_21 = arith.constant 0 : index
    %32 = vector.load %arg10[%c1, %c0_20, %c0_21] : memref<8x16x512xf32, #tpu.memory_space<vmem>>, vector<1x16x512xf32>
    %33 = vector.shape_cast %32 : vector<1x16x512xf32> to vector<16x512xf32>
    %c0_22 = arith.constant 0 : index
    %c0_23 = arith.constant 0 : index
    %34 = vector.load %arg5[%c0_22, %c0_23] : memref<128x512xf32, #tpu.memory_space<vmem>>, vector<128x512xf32>
    %cst_24 = arith.constant dense<0.000000e+00> : vector<16x512xf32>
    %35 = tpu.matmul %31, %34, %cst_24 {dimension_numbers = #tpu.dot_dimension_numbers<[1], [0], [0], [1], [0, 0, 1, 1], [], []>} : vector<16x128xf32>, vector<128x512xf32>, vector<16x512xf32> -> vector<16x512xf32>
    %36 = arith.addf %33, %35 : vector<16x512xf32>
    %37 = vector.extract_strided_slice %36 {offsets = [0, 0], sizes = [16, 384], strides = [1, 1]} : vector<16x512xf32> to vector<16x384xf32>
    %38 = arith.negf %37 : vector<16x384xf32>
    %39 = math.exp %38 : vector<16x384xf32>
    %cst_25 = arith.constant 1.000000e+00 : f32
    %40 = vector.broadcast %cst_25 : f32 to vector<16x384xf32>
    %41 = arith.addf %40, %39 : vector<16x384xf32>
    %42 = arith.divf %40, %41 : vector<16x384xf32>
    %43 = vector.extract_strided_slice %42 {offsets = [0, 0], sizes = [16, 128], strides = [1, 1]} : vector<16x384xf32> to vector<16x128xf32>
    %44 = vector.extract_strided_slice %42 {offsets = [0, 128], sizes = [16, 128], strides = [1, 1]} : vector<16x384xf32> to vector<16x128xf32>
    %45 = vector.extract_strided_slice %42 {offsets = [0, 256], sizes = [16, 128], strides = [1, 1]} : vector<16x384xf32> to vector<16x128xf32>
    %46 = vector.extract_strided_slice %36 {offsets = [0, 384], sizes = [16, 128], strides = [1, 1]} : vector<16x512xf32> to vector<16x128xf32>
    %47 = math.tanh %46 : vector<16x128xf32>
    %48 = arith.mulf %44, %29 : vector<16x128xf32>
    %49 = arith.mulf %43, %47 : vector<16x128xf32>
    %50 = arith.addf %48, %49 : vector<16x128xf32>
    %51 = math.tanh %50 : vector<16x128xf32>
    %52 = arith.mulf %45, %51 : vector<16x128xf32>
    %c2 = arith.constant 2 : index
    %c0_26 = arith.constant 0 : index
    %c0_27 = arith.constant 0 : index
    %53 = vector.load %arg10[%c2, %c0_26, %c0_27] : memref<8x16x512xf32, #tpu.memory_space<vmem>>, vector<1x16x512xf32>
    %54 = vector.shape_cast %53 : vector<1x16x512xf32> to vector<16x512xf32>
    %c0_28 = arith.constant 0 : index
    %c0_29 = arith.constant 0 : index
    %55 = vector.load %arg5[%c0_28, %c0_29] : memref<128x512xf32, #tpu.memory_space<vmem>>, vector<128x512xf32>
    %cst_30 = arith.constant dense<0.000000e+00> : vector<16x512xf32>
    %56 = tpu.matmul %52, %55, %cst_30 {dimension_numbers = #tpu.dot_dimension_numbers<[1], [0], [0], [1], [0, 0, 1, 1], [], []>} : vector<16x128xf32>, vector<128x512xf32>, vector<16x512xf32> -> vector<16x512xf32>
    %57 = arith.addf %54, %56 : vector<16x512xf32>
    %58 = vector.extract_strided_slice %57 {offsets = [0, 0], sizes = [16, 384], strides = [1, 1]} : vector<16x512xf32> to vector<16x384xf32>
    %59 = arith.negf %58 : vector<16x384xf32>
    %60 = math.exp %59 : vector<16x384xf32>
    %cst_31 = arith.constant 1.000000e+00 : f32
    %61 = vector.broadcast %cst_31 : f32 to vector<16x384xf32>
    %62 = arith.addf %61, %60 : vector<16x384xf32>
    %63 = arith.divf %61, %62 : vector<16x384xf32>
    %64 = vector.extract_strided_slice %63 {offsets = [0, 0], sizes = [16, 128], strides = [1, 1]} : vector<16x384xf32> to vector<16x128xf32>
    %65 = vector.extract_strided_slice %63 {offsets = [0, 128], sizes = [16, 128], strides = [1, 1]} : vector<16x384xf32> to vector<16x128xf32>
    %66 = vector.extract_strided_slice %63 {offsets = [0, 256], sizes = [16, 128], strides = [1, 1]} : vector<16x384xf32> to vector<16x128xf32>
    %67 = vector.extract_strided_slice %57 {offsets = [0, 384], sizes = [16, 128], strides = [1, 1]} : vector<16x512xf32> to vector<16x128xf32>
    %68 = math.tanh %67 : vector<16x128xf32>
    %69 = arith.mulf %65, %50 : vector<16x128xf32>
    %70 = arith.mulf %64, %68 : vector<16x128xf32>
    %71 = arith.addf %69, %70 : vector<16x128xf32>
    %72 = math.tanh %71 : vector<16x128xf32>
    %73 = arith.mulf %66, %72 : vector<16x128xf32>
    %c3 = arith.constant 3 : index
    %c0_32 = arith.constant 0 : index
    %c0_33 = arith.constant 0 : index
    %74 = vector.load %arg10[%c3, %c0_32, %c0_33] : memref<8x16x512xf32, #tpu.memory_space<vmem>>, vector<1x16x512xf32>
    %75 = vector.shape_cast %74 : vector<1x16x512xf32> to vector<16x512xf32>
    %c0_34 = arith.constant 0 : index
    %c0_35 = arith.constant 0 : index
    %76 = vector.load %arg5[%c0_34, %c0_35] : memref<128x512xf32, #tpu.memory_space<vmem>>, vector<128x512xf32>
    %cst_36 = arith.constant dense<0.000000e+00> : vector<16x512xf32>
    %77 = tpu.matmul %73, %76, %cst_36 {dimension_numbers = #tpu.dot_dimension_numbers<[1], [0], [0], [1], [0, 0, 1, 1], [], []>} : vector<16x128xf32>, vector<128x512xf32>, vector<16x512xf32> -> vector<16x512xf32>
    %78 = arith.addf %75, %77 : vector<16x512xf32>
    %79 = vector.extract_strided_slice %78 {offsets = [0, 0], sizes = [16, 384], strides = [1, 1]} : vector<16x512xf32> to vector<16x384xf32>
    %80 = arith.negf %79 : vector<16x384xf32>
    %81 = math.exp %80 : vector<16x384xf32>
    %cst_37 = arith.constant 1.000000e+00 : f32
    %82 = vector.broadcast %cst_37 : f32 to vector<16x384xf32>
    %83 = arith.addf %82, %81 : vector<16x384xf32>
    %84 = arith.divf %82, %83 : vector<16x384xf32>
    %85 = vector.extract_strided_slice %84 {offsets = [0, 0], sizes = [16, 128], strides = [1, 1]} : vector<16x384xf32> to vector<16x128xf32>
    %86 = vector.extract_strided_slice %84 {offsets = [0, 128], sizes = [16, 128], strides = [1, 1]} : vector<16x384xf32> to vector<16x128xf32>
    %87 = vector.extract_strided_slice %84 {offsets = [0, 256], sizes = [16, 128], strides = [1, 1]} : vector<16x384xf32> to vector<16x128xf32>
    %88 = vector.extract_strided_slice %78 {offsets = [0, 384], sizes = [16, 128], strides = [1, 1]} : vector<16x512xf32> to vector<16x128xf32>
    %89 = math.tanh %88 : vector<16x128xf32>
    %90 = arith.mulf %86, %71 : vector<16x128xf32>
    %91 = arith.mulf %85, %89 : vector<16x128xf32>
    %92 = arith.addf %90, %91 : vector<16x128xf32>
    %93 = math.tanh %92 : vector<16x128xf32>
    %94 = arith.mulf %87, %93 : vector<16x128xf32>
    %c4 = arith.constant 4 : index
    %c0_38 = arith.constant 0 : index
    %c0_39 = arith.constant 0 : index
    %95 = vector.load %arg10[%c4, %c0_38, %c0_39] : memref<8x16x512xf32, #tpu.memory_space<vmem>>, vector<1x16x512xf32>
    %96 = vector.shape_cast %95 : vector<1x16x512xf32> to vector<16x512xf32>
    %c0_40 = arith.constant 0 : index
    %c0_41 = arith.constant 0 : index
    %97 = vector.load %arg5[%c0_40, %c0_41] : memref<128x512xf32, #tpu.memory_space<vmem>>, vector<128x512xf32>
    %cst_42 = arith.constant dense<0.000000e+00> : vector<16x512xf32>
    %98 = tpu.matmul %94, %97, %cst_42 {dimension_numbers = #tpu.dot_dimension_numbers<[1], [0], [0], [1], [0, 0, 1, 1], [], []>} : vector<16x128xf32>, vector<128x512xf32>, vector<16x512xf32> -> vector<16x512xf32>
    %99 = arith.addf %96, %98 : vector<16x512xf32>
    %100 = vector.extract_strided_slice %99 {offsets = [0, 0], sizes = [16, 384], strides = [1, 1]} : vector<16x512xf32> to vector<16x384xf32>
    %101 = arith.negf %100 : vector<16x384xf32>
    %102 = math.exp %101 : vector<16x384xf32>
    %cst_43 = arith.constant 1.000000e+00 : f32
    %103 = vector.broadcast %cst_43 : f32 to vector<16x384xf32>
    %104 = arith.addf %103, %102 : vector<16x384xf32>
    %105 = arith.divf %103, %104 : vector<16x384xf32>
    %106 = vector.extract_strided_slice %105 {offsets = [0, 0], sizes = [16, 128], strides = [1, 1]} : vector<16x384xf32> to vector<16x128xf32>
    %107 = vector.extract_strided_slice %105 {offsets = [0, 128], sizes = [16, 128], strides = [1, 1]} : vector<16x384xf32> to vector<16x128xf32>
    %108 = vector.extract_strided_slice %105 {offsets = [0, 256], sizes = [16, 128], strides = [1, 1]} : vector<16x384xf32> to vector<16x128xf32>
    %109 = vector.extract_strided_slice %99 {offsets = [0, 384], sizes = [16, 128], strides = [1, 1]} : vector<16x512xf32> to vector<16x128xf32>
    %110 = math.tanh %109 : vector<16x128xf32>
    %111 = arith.mulf %107, %92 : vector<16x128xf32>
    %112 = arith.mulf %106, %110 : vector<16x128xf32>
    %113 = arith.addf %111, %112 : vector<16x128xf32>
    %114 = math.tanh %113 : vector<16x128xf32>
    %115 = arith.mulf %108, %114 : vector<16x128xf32>
    %c5 = arith.constant 5 : index
    %c0_44 = arith.constant 0 : index
    %c0_45 = arith.constant 0 : index
    %116 = vector.load %arg10[%c5, %c0_44, %c0_45] : memref<8x16x512xf32, #tpu.memory_space<vmem>>, vector<1x16x512xf32>
    %117 = vector.shape_cast %116 : vector<1x16x512xf32> to vector<16x512xf32>
    %c0_46 = arith.constant 0 : index
    %c0_47 = arith.constant 0 : index
    %118 = vector.load %arg5[%c0_46, %c0_47] : memref<128x512xf32, #tpu.memory_space<vmem>>, vector<128x512xf32>
    %cst_48 = arith.constant dense<0.000000e+00> : vector<16x512xf32>
    %119 = tpu.matmul %115, %118, %cst_48 {dimension_numbers = #tpu.dot_dimension_numbers<[1], [0], [0], [1], [0, 0, 1, 1], [], []>} : vector<16x128xf32>, vector<128x512xf32>, vector<16x512xf32> -> vector<16x512xf32>
    %120 = arith.addf %117, %119 : vector<16x512xf32>
    %121 = vector.extract_strided_slice %120 {offsets = [0, 0], sizes = [16, 384], strides = [1, 1]} : vector<16x512xf32> to vector<16x384xf32>
    %122 = arith.negf %121 : vector<16x384xf32>
    %123 = math.exp %122 : vector<16x384xf32>
    %cst_49 = arith.constant 1.000000e+00 : f32
    %124 = vector.broadcast %cst_49 : f32 to vector<16x384xf32>
    %125 = arith.addf %124, %123 : vector<16x384xf32>
    %126 = arith.divf %124, %125 : vector<16x384xf32>
    %127 = vector.extract_strided_slice %126 {offsets = [0, 0], sizes = [16, 128], strides = [1, 1]} : vector<16x384xf32> to vector<16x128xf32>
    %128 = vector.extract_strided_slice %126 {offsets = [0, 128], sizes = [16, 128], strides = [1, 1]} : vector<16x384xf32> to vector<16x128xf32>
    %129 = vector.extract_strided_slice %126 {offsets = [0, 256], sizes = [16, 128], strides = [1, 1]} : vector<16x384xf32> to vector<16x128xf32>
    %130 = vector.extract_strided_slice %120 {offsets = [0, 384], sizes = [16, 128], strides = [1, 1]} : vector<16x512xf32> to vector<16x128xf32>
    %131 = math.tanh %130 : vector<16x128xf32>
    %132 = arith.mulf %128, %113 : vector<16x128xf32>
    %133 = arith.mulf %127, %131 : vector<16x128xf32>
    %134 = arith.addf %132, %133 : vector<16x128xf32>
    %135 = math.tanh %134 : vector<16x128xf32>
    %136 = arith.mulf %129, %135 : vector<16x128xf32>
    %c6 = arith.constant 6 : index
    %c0_50 = arith.constant 0 : index
    %c0_51 = arith.constant 0 : index
    %137 = vector.load %arg10[%c6, %c0_50, %c0_51] : memref<8x16x512xf32, #tpu.memory_space<vmem>>, vector<1x16x512xf32>
    %138 = vector.shape_cast %137 : vector<1x16x512xf32> to vector<16x512xf32>
    %c0_52 = arith.constant 0 : index
    %c0_53 = arith.constant 0 : index
    %139 = vector.load %arg5[%c0_52, %c0_53] : memref<128x512xf32, #tpu.memory_space<vmem>>, vector<128x512xf32>
    %cst_54 = arith.constant dense<0.000000e+00> : vector<16x512xf32>
    %140 = tpu.matmul %136, %139, %cst_54 {dimension_numbers = #tpu.dot_dimension_numbers<[1], [0], [0], [1], [0, 0, 1, 1], [], []>} : vector<16x128xf32>, vector<128x512xf32>, vector<16x512xf32> -> vector<16x512xf32>
    %141 = arith.addf %138, %140 : vector<16x512xf32>
    %142 = vector.extract_strided_slice %141 {offsets = [0, 0], sizes = [16, 384], strides = [1, 1]} : vector<16x512xf32> to vector<16x384xf32>
    %143 = arith.negf %142 : vector<16x384xf32>
    %144 = math.exp %143 : vector<16x384xf32>
    %cst_55 = arith.constant 1.000000e+00 : f32
    %145 = vector.broadcast %cst_55 : f32 to vector<16x384xf32>
    %146 = arith.addf %145, %144 : vector<16x384xf32>
    %147 = arith.divf %145, %146 : vector<16x384xf32>
    %148 = vector.extract_strided_slice %147 {offsets = [0, 0], sizes = [16, 128], strides = [1, 1]} : vector<16x384xf32> to vector<16x128xf32>
    %149 = vector.extract_strided_slice %147 {offsets = [0, 128], sizes = [16, 128], strides = [1, 1]} : vector<16x384xf32> to vector<16x128xf32>
    %150 = vector.extract_strided_slice %147 {offsets = [0, 256], sizes = [16, 128], strides = [1, 1]} : vector<16x384xf32> to vector<16x128xf32>
    %151 = vector.extract_strided_slice %141 {offsets = [0, 384], sizes = [16, 128], strides = [1, 1]} : vector<16x512xf32> to vector<16x128xf32>
    %152 = math.tanh %151 : vector<16x128xf32>
    %153 = arith.mulf %149, %134 : vector<16x128xf32>
    %154 = arith.mulf %148, %152 : vector<16x128xf32>
    %155 = arith.addf %153, %154 : vector<16x128xf32>
    %156 = math.tanh %155 : vector<16x128xf32>
    %157 = arith.mulf %150, %156 : vector<16x128xf32>
    %c7 = arith.constant 7 : index
    %c0_56 = arith.constant 0 : index
    %c0_57 = arith.constant 0 : index
    %158 = vector.load %arg10[%c7, %c0_56, %c0_57] : memref<8x16x512xf32, #tpu.memory_space<vmem>>, vector<1x16x512xf32>
    %159 = vector.shape_cast %158 : vector<1x16x512xf32> to vector<16x512xf32>
    %c0_58 = arith.constant 0 : index
    %c0_59 = arith.constant 0 : index
    %160 = vector.load %arg5[%c0_58, %c0_59] : memref<128x512xf32, #tpu.memory_space<vmem>>, vector<128x512xf32>
    %cst_60 = arith.constant dense<0.000000e+00> : vector<16x512xf32>
    %161 = tpu.matmul %157, %160, %cst_60 {dimension_numbers = #tpu.dot_dimension_numbers<[1], [0], [0], [1], [0, 0, 1, 1], [], []>} : vector<16x128xf32>, vector<128x512xf32>, vector<16x512xf32> -> vector<16x512xf32>
    %162 = arith.addf %159, %161 : vector<16x512xf32>
    %163 = vector.extract_strided_slice %162 {offsets = [0, 0], sizes = [16, 384], strides = [1, 1]} : vector<16x512xf32> to vector<16x384xf32>
    %164 = arith.negf %163 : vector<16x384xf32>
    %165 = math.exp %164 : vector<16x384xf32>
    %cst_61 = arith.constant 1.000000e+00 : f32
    %166 = vector.broadcast %cst_61 : f32 to vector<16x384xf32>
    %167 = arith.addf %166, %165 : vector<16x384xf32>
    %168 = arith.divf %166, %167 : vector<16x384xf32>
    %169 = vector.extract_strided_slice %168 {offsets = [0, 0], sizes = [16, 128], strides = [1, 1]} : vector<16x384xf32> to vector<16x128xf32>
    %170 = vector.extract_strided_slice %168 {offsets = [0, 128], sizes = [16, 128], strides = [1, 1]} : vector<16x384xf32> to vector<16x128xf32>
    %171 = vector.extract_strided_slice %168 {offsets = [0, 256], sizes = [16, 128], strides = [1, 1]} : vector<16x384xf32> to vector<16x128xf32>
    %172 = vector.extract_strided_slice %162 {offsets = [0, 384], sizes = [16, 128], strides = [1, 1]} : vector<16x512xf32> to vector<16x128xf32>
    %173 = math.tanh %172 : vector<16x128xf32>
    %174 = arith.mulf %170, %155 : vector<16x128xf32>
    %175 = arith.mulf %169, %173 : vector<16x128xf32>
    %176 = arith.addf %174, %175 : vector<16x128xf32>
    %177 = math.tanh %176 : vector<16x128xf32>
    %178 = arith.mulf %171, %177 : vector<16x128xf32>
    %c0_62 = arith.constant 0 : index
    %c0_63 = arith.constant 0 : index
    %179 = vector.load %arg7[%c0_62, %c0_63] : memref<128x384xf32, #tpu.memory_space<vmem>>, vector<128x384xf32>
    %cst_64 = arith.constant dense<0.000000e+00> : vector<16x384xf32>
    %180 = tpu.matmul %178, %179, %cst_64 {dimension_numbers = #tpu.dot_dimension_numbers<[1], [0], [0], [1], [0, 0, 1, 1], [], []>} : vector<16x128xf32>, vector<128x384xf32>, vector<16x384xf32> -> vector<16x384xf32>
    %c0_65 = arith.constant 0 : index
    %c0_66 = arith.constant 0 : index
    %181 = vector.load %arg8[%c0_65, %c0_66] : memref<1x384xf32, #tpu.memory_space<vmem>>, vector<1x384xf32>
    %182 = vector.broadcast %181 : vector<1x384xf32> to vector<16x384xf32>
    %183 = arith.addf %180, %182 : vector<16x384xf32>
    %184 = vector.shape_cast %183 : vector<16x384xf32> to vector<48x128xf32>
    %cst_67 = arith.constant dense<0xFF800000> : vector<48xf32>
    %185 = vector.multi_reduction <maximumf>, %184, %cst_67 [1] : vector<48x128xf32> to vector<48xf32>
    %186 = vector.shape_cast %185 : vector<48xf32> to vector<48x1xf32>
    %187 = vector.broadcast %186 : vector<48x1xf32> to vector<48x128xf32>
    %188 = arith.subf %184, %187 : vector<48x128xf32>
    %189 = math.exp %188 : vector<48x128xf32>
    %cst_68 = arith.constant dense<0.000000e+00> : vector<48xf32>
    %190 = vector.multi_reduction <add>, %189, %cst_68 [1] : vector<48x128xf32> to vector<48xf32>
    %191 = vector.shape_cast %190 : vector<48xf32> to vector<48x1xf32>
    %192 = math.log %191 : vector<48x1xf32>
    %193 = vector.broadcast %192 : vector<48x1xf32> to vector<48x128xf32>
    %194 = arith.subf %188, %193 : vector<48x128xf32>
    %195 = vector.shape_cast %194 : vector<48x128xf32> to vector<16x384xf32>
    %c0_69 = arith.constant 0 : index
    %c0_70 = arith.constant 0 : index
    %196 = vector.load %arg9[%c0_69, %c0_70] : memref<16x384xf32, #tpu.memory_space<vmem>>, vector<16x384xf32>
    tpu.vector_store %arg9[%c0_69, %c0_70], %195 {strides = array<i32>} : memref<16x384xf32, #tpu.memory_space<vmem>>, vector<16x384xf32>,
    return
  }
  func.func @transform_0(%arg0: i32) -> (i32, i32, i32) {
    %c0_i32 = arith.constant 0 : i32
    %c0_i32_0 = arith.constant 0 : i32
    %c0_i32_1 = arith.constant 0 : i32
    return %c0_i32, %arg0, %c0_i32_0 : i32, i32, i32
  }
  func.func @transform_1(%arg0: i32) -> (i32, i32) {
    %c0_i32 = arith.constant 0 : i32
    %c0_i32_0 = arith.constant 0 : i32
    return %arg0, %c0_i32 : i32, i32
  }
  func.func @transform_2(%arg0: i32) -> (i32, i32) {
    %c0_i32 = arith.constant 0 : i32
    %c0_i32_0 = arith.constant 0 : i32
    return %arg0, %c0_i32 : i32, i32
  }
  func.func @transform_3(%arg0: i32) -> (i32, i32) {
    %c0_i32 = arith.constant 0 : i32
    %c0_i32_0 = arith.constant 0 : i32
    %c0_i32_1 = arith.constant 0 : i32
    return %c0_i32, %c0_i32_0 : i32, i32
  }
  func.func @transform_4(%arg0: i32) -> (i32, i32) {
    %c0_i32 = arith.constant 0 : i32
    %c0_i32_0 = arith.constant 0 : i32
    %c0_i32_1 = arith.constant 0 : i32
    return %c0_i32, %c0_i32_0 : i32, i32
  }
  func.func @transform_5(%arg0: i32) -> (i32, i32) {
    %c0_i32 = arith.constant 0 : i32
    %c0_i32_0 = arith.constant 0 : i32
    %c0_i32_1 = arith.constant 0 : i32
    return %c0_i32, %c0_i32_0 : i32, i32
  }
  func.func @transform_6(%arg0: i32) -> (i32, i32) {
    %c0_i32 = arith.constant 0 : i32
    %c0_i32_0 = arith.constant 0 : i32
    %c0_i32_1 = arith.constant 0 : i32
    return %c0_i32, %c0_i32_0 : i32, i32
  }
  func.func @transform_7(%arg0: i32) -> (i32, i32) {
    %c0_i32 = arith.constant 0 : i32
    %c0_i32_0 = arith.constant 0 : i32
    %c0_i32_1 = arith.constant 0 : i32
    return %c0_i32, %c0_i32_0 : i32, i32
  }
  func.func @transform_8(%arg0: i32) -> (i32, i32) {
    %c0_i32 = arith.constant 0 : i32
    %c0_i32_0 = arith.constant 0 : i32
    return %arg0, %c0_i32 : i32, i32
  }
}

</mosaic_0001>

<bundles_post_ra>
// kernel: lstm_network_forward.1
= control target key start
LH: loop header
LB: loop body
LE: loop exit
PB: predicated region body
PF: predicated region fallthrough
CT: control target
= control target key end

     0   :  { %s4331_s27 = smov 0   ;;  %s4333_s28 = smov 0   ;;  %s5650_s0 = inlined_call_operand.vmem [shape: bf16[8,32,16], index: 0, kind: input, shape index: {}]   ;;  %s5651_s1 = inlined_call_operand.vmem [shape: f32[32,128], index: 1, kind: input, shape index: {}]   ;;  %s5652_s2 = inlined_call_operand.vmem [shape: f32[32,128], index: 2, kind: input, shape index: {}]   ;;  %s5653_s3 = inlined_call_operand.vmem [shape: bf16[16,512], index: 3, kind: input, shape index: {}]   ;;  %s5654_s4 = inlined_call_operand.vmem [shape: f32[128,512], index: 4, kind: input, shape index: {}]   ;;  %s5655_s5 = inlined_call_operand.vmem [shape: f32[1,512], index: 5, kind: input, shape index: {}]   ;;  %s5656_s6 = inlined_call_operand.vmem [shape: f32[128,384], index: 6, kind: input, shape index: {}]   ;;  %s5657_s7 = inlined_call_operand.vmem [shape: f32[1,384], index: 7, kind: input, shape index: {}]   ;;  %s5658_s8 = inlined_call_operand.vmem [shape: f32[32,384], index: 8, kind: output, shape index: {}]  }
   0x1   :  { %s4335_s29 = smov 0  }
   0x2 LB: > { %s3216_s30 = sadd.s32 4294967295, %s4282_s29   ;;  %s4348_s9 = sadd.s32 1, %s4282_s29   ;;  %s4282_s29 = sphi %s4335_s29, %s5774_s29   ;;  %s4278_s28 = sphi %s4333_s28, %s5773_s28   ;;  %s4274_s27 = sphi %s4331_s27, %s5772_s27  }
   0x3   : > { %s22_s10 = ssub.s32 %s4282_s29, %s4348_s9  ;;  %s25_s11 = sadd.s32 1, %s4278_s28 }
   0x4   : > { %p23_p0 = scmp.eq.s32.totalorder %s22_s10, 0  ;;  %p32_p1 = scmp.ne.s32.totalorder %s4278_s28, %s4274_s27 }
   0x5   : > { %p33_p2 = scmp.eq.s32.totalorder %s4282_s29, 0  ;;  %p3219_p4 = scmp.ge.s32.totalorder %s4282_s29, 2 }
   0x6   : > { %s4357_s12 = scalar_select %p23_p0, %s4278_s28, %s25_s11  }
   0x7   : > { %p34_p3 = por %p33_p2, %p32_p1  ;;  %256 = sbr.rel (%p3219_p4) target bundleno = 22 (0x16), region = 36 }
   0xe   : > { %259 = sbr.rel (!%p34_p3) target bundleno = 22 (0x16), region = 40  ;;  %s261_s13 = sand.u32 (%p34_p3), 1, %s4278_s28  }
   0xf   : > { %s3309_s14 = sshll.u32 (%p34_p3), %s4282_s29, 3  ;;  %s3220_s15 = sshll.u32 (%p34_p3), %s261_s13, 6 }
  0x10   : > { %s266_s18 = scalar_lea.vmem (%p34_p3), %s5650_s0, %s3309_s14  ;;  %s263_s19 = scalar_lea.vmem (%p34_p3), [#allocation3], %s3220_s15 }
  0x11   : > { %v282_v0 = vld [vmem:[%s266_s18] sm:$0xff] (%p34_p3)   ;;  %v286_v1 = vld [vmem:[%s266_s18 + $0x10] sm:$0xff] (%p34_p3)  }
  0x12   : > { %v290_v2 = vld [vmem:[%s266_s18 + $0x20] sm:$0xff] (%p34_p3)   ;;  %283 = vst [vmem:[%s263_s19] sm:$0xff] (%p34_p3), %v282_v0   ;;  %287 = vst [vmem:[%s263_s19 + $0x8] sm:$0xff] (%p34_p3), %v286_v1   ;;  %v294_v3 = vld [vmem:[%s266_s18 + $0x30] sm:$0xff] (%p34_p3)  }
  0x13   : > { %291 = vst [vmem:[%s263_s19 + $0x10] sm:$0xff] (%p34_p3), %v290_v2   ;;  %v298_v4 = vld [vmem:[%s266_s18 + $0x40] sm:$0xff] (%p34_p3)   ;;  %v302_v5 = vld [vmem:[%s266_s18 + $0x50] sm:$0xff] (%p34_p3)   ;;  %295 = vst [vmem:[%s263_s19 + $0x18] sm:$0xff] (%p34_p3), %v294_v3  }
  0x14   : > { %299 = vst [vmem:[%s263_s19 + $0x20] sm:$0xff] (%p34_p3), %v298_v4   ;;  %303 = vst [vmem:[%s263_s19 + $0x28] sm:$0xff] (%p34_p3), %v302_v5   ;;  %v306_v6 = vld [vmem:[%s266_s18 + $0x60] sm:$0xff] (%p34_p3)   ;;  %v310_v7 = vld [vmem:[%s266_s18 + $0x70] sm:$0xff] (%p34_p3)  }
  0x15   : > { %307 = vst [vmem:[%s263_s19 + $0x30] sm:$0xff] %v306_v6   ;;  %311 = vst [vmem:[%s263_s19 + $0x38] sm:$0xff] %v310_v7  }
  0x16 PF: > { %p3223_p5 = scmp.ge.s32.totalorder %s4282_s29, 1  ;;  %p385_p6 = scmp.lt.s32.totalorder %s4282_s29, 3 }
  0x18   : > { %p386_p7 = pnand %p3223_p5, %p385_p6 }
  0x1a   : > { %389 = sbr.rel (%p386_p7) target bundleno = 2740 (0xab4), region = 89 }
  0x21   : > { %v3966_v8 = vld [vmem:[%s5653_s3 + $0x4] ss:$16 sps:$4 sm:$0xff]   ;;  %s392_s22 = sand.u32 1, %s4274_s27   ;;  %v3968_v9 = vld [vmem:[%s5653_s3 + $0xc] ss:$16 sps:$4 sm:$0xff]   ;;  %v4284_v10 = vmov 0  }
  0x22   : > { %616 = vmatprep.mubr.bf16.mxu0 %v4284_v10  ;;  %729 = vmatprep.mubr.bf16.mxu1 %v4284_v10  ;;  %s3224_s25 = sshll.u32 %s392_s22, 6  ;;  %v3970_v11 = vld [vmem:[%s5653_s3] ss:$16 sps:$4 sm:$0xff]   ;;  %v3971_v12 = vld [vmem:[%s5653_s3 + $0x8] ss:$16 sps:$4 sm:$0xff]   ;;  %vm559_vm0 = vcmask 130048  }
  0x23   : > { %584 = vmatprep.subr.bf16.mxu0 %v3966_v8  ;;  %v887_v13 = vld [vmem:[%s5654_s4 + $0x8] sm:$0xff]  ;;  %697 = vmatprep.subr.bf16.mxu1 %v3968_v9  ;;  %s4385_s15 = scalar_lea.vmem [#allocation3], %s3224_s25  ;;  %v886_v16 = vld [vmem:[%s5654_s4] sm:$0xff]  ;;  %v889_v25 = vld [vmem:[%s5654_s4 + $0x18] sm:$0xff]  ;;  %s3225_s27 = sshll.u32 %s3216_s30, 1  ;;  %vm2910_vm1 = vcmask 1040384  }
  0x24   : > { %v3972_v14 = vld [vmem:[%s4385_s15] sm:$0xff]   ;;  %585 = vmatpush1.bf16.msra.mxu0 %v3970_v11  ;;  %698 = vmatpush1.bf16.msra.mxu1 %v3971_v12  ;;  %v891_v15 = vld [vmem:[%s5654_s4 + $0x28] sm:$0xff]  ;;  %v893_v26 = vld [vmem:[%s5654_s4 + $0x38] sm:$0xff]  ;;  %p438_p8 = scmp.lt.s32.totalorder %s3225_s27, 3  ;;  %vm2913_vm2 = vcmask 1041409   ;;  %vm2916_vm3 = vcmask 1042434  }
  0x25   : > { %v890_v17 = vld [vmem:[%s5654_s4 + $0x20] sm:$0xff]  ;;  %v4397_v18 = vpack.c.bf16 %v891_v15, %v887_v13  ;;  %v895_v20 = vld [vmem:[%s5654_s4 + $0x48] sm:$0xff]  ;;  %v4425_v27 = vpack.c.bf16 %v893_v26, %v889_v25  ;;  %v888_v32 = vld [vmem:[%s5654_s4 + $0x10] sm:$0xff]  ;;  %vm2919_vm4 = vcmask 1043459   ;;  %vm2922_vm5 = vcmask 1044484  }
  0x26   : > { %v4399_v19 = vpack.c.bf16 %v890_v17, %v886_v16  ;;  %v899_v21 = vld [vmem:[%s5654_s4 + $0x68] sm:$0xff]  ;;  %v894_v22 = vld [vmem:[%s5654_s4 + $0x40] sm:$0xff]  ;;  %v892_v34 = vld [vmem:[%s5654_s4 + $0x30] sm:$0xff]  ;;  %s5776_s27 = smov (!%p438_p8, %s3225_s27), 3  ;;  %vm2925_vm6 = vcmask 1045509   ;;  %vm2928_vm7 = vcmask 1046534  }
  0x27   : > { %3243 = vmatmul.mubr.msk.bf16.vlgmr.msra.gmra.mrb[0].mxu0 %vm559_vm0, %v3972_v14  ;;  %3251 = vmatmul.mubr.msk.bf16.vlgmr.msra.gmra.mrb[0].mxu1 %vm559_vm0, %v3972_v14  ;;  %v4412_v23 = vpack.c.bf16 %v899_v21, %v895_v20  ;;  %v898_v24 = vld [vmem:[%s5654_s4 + $0x60] sm:$0xff]  ;;  %v3973_v28 = vld [vmem:[%s4385_s15 + $0x8] sm:$0xff]   ;;  %v4454_v37 = vpack.c.bf16 %v892_v34, %v888_v32  ;;  %v897_v38 = vld [vmem:[%s5654_s4 + $0x58] sm:$0xff]  ;;  %s3226_s14 = sshll.u32 %s5776_s27, 3  ;;  %vm2931_vm8 = vcmask 1047559   ;;  %s3939_s13 = smul.u32 24, %s5776_s27 }
  0x28   : > { %3364 = vmatprep.subr.bf16.mxu0 %v4397_v18  ;;  %626 = vmatprep.mubr.bf16.mxu0 %v4284_v10  ;;  %v4430_v29 = vpack.c.bf16 %v898_v24, %v894_v22  ;;  %v903_v30 = vld [vmem:[%s5654_s4 + $0x88] sm:$0xff]  ;;  %v902_v35 = vld [vmem:[%s5654_s4 + $0x80] sm:$0xff]  ;;  %v901_v39 = vld [vmem:[%s5654_s4 + $0x78] sm:$0xff]  ;;  %s441_s16 = scalar_lea.vmem %s5651_s1, %s3226_s14  ;;  %s447_s20 = scalar_lea.vmem %s5652_s2, %s3226_s14 }
  0x29   : > { %3366 = vmatpush1.bf16.msra.mxu0 %v4399_v19  ;;  %739 = vmatprep.mubr.bf16.mxu1 %v4284_v10  ;;  %v907_v31 = vld [vmem:[%s5654_s4 + $0xa8] sm:$0xff]  ;;  %v906_v36 = vld [vmem:[%s5654_s4 + $0xa0] sm:$0xff]  ;;  %v4462_v40 = vpack.c.bf16 %v901_v39, %v897_v38  ;;  %v896_v44 = vld [vmem:[%s5654_s4 + $0x50] sm:$0xff]  ;;  %s5613_s29 = scalar_lea.vmem %s5658_s8, %s3939_s13 }
  0x2a   : > { %3368 = vmatprep.subr.bf16.mxu0 %v4412_v23  ;;  %3396 = vmatprep.subr.bf16.mxu1 %v4425_v27  ;;  %v4443_v33 = vpack.c.bf16 %v907_v31, %v903_v30  ;;  %v911_v41 = vld [vmem:[%s5654_s4 + $0xc8] sm:$0xff]  ;;  %v4469_v42 = vpack.c.bf16 %v906_v36, %v902_v35  ;;  %v900_v45 = vld [vmem:[%s5654_s4 + $0x70] sm:$0xff]  ;;  %v910_v48 = vld [vmem:[%s5654_s4 + $0xc0] sm:$0xff] }
  0x2b   : > { %3398 = vmatpush1.bf16.msra.mxu1 %v4454_v37  ;;  %v915_v43 = vld [vmem:[%s5654_s4 + $0xe8] sm:$0xff]  ;;  %v4484_v47 = vpack.c.bf16 %v900_v45, %v896_v44  ;;  %v914_v49 = vld [vmem:[%s5654_s4 + $0xe0] sm:$0xff]  ;;  %v905_v50 = vld [vmem:[%s5654_s4 + $0x98] sm:$0xff] }
  0x2c   : > { %3400 = vmatprep.subr.bf16.mxu1 %v4462_v40  ;;  %v4482_v46 = vpack.c.bf16 %v915_v43, %v911_v41  ;;  %v909_v51 = vld [vmem:[%s5654_s4 + $0xb8] sm:$0xff]  ;;  %v919_v53 = vld [vmem:[%s5654_s4 + $0x108] sm:$0xff]  ;;  %v4512_v55 = vpack.c.bf16 %v914_v49, %v910_v48  ;;  %v904_v56 = vld [vmem:[%s5654_s4 + $0x90] sm:$0xff] }
  0x2d   : > { %3370 = vmatpush1.bf16.msra.mxu0 %v4430_v29  ;;  %v4502_v52 = vpack.c.bf16 %v909_v51, %v905_v50  ;;  %v923_v54 = vld [vmem:[%s5654_s4 + $0x128] sm:$0xff]  ;;  %v908_v57 = vld [vmem:[%s5654_s4 + $0xb0] sm:$0xff]  ;;  %v918_v58 = vld [vmem:[%s5654_s4 + $0x100] sm:$0xff] }
  0x2e   : > { %3372 = vmatprep.subr.bf16.mxu0 %v4443_v33  ;;  %v4525_v59 = vpack.c.bf16 %v923_v54, %v919_v53  ;;  %v4527_v60 = vpack.c.bf16 %v908_v57, %v904_v56  ;;  %v922_v61 = vld [vmem:[%s5654_s4 + $0x120] sm:$0xff]  ;;  %v913_v62 = vld [vmem:[%s5654_s4 + $0xd8] sm:$0xff]  ;;  %v3974_v0 = vld [vmem:[%s4385_s15 + $0x10] sm:$0xff]  }
  0x2f   : > { %3244 = vmatmul.mubr.msk.bf16.gmra.mrb[4].mxu0 %vm559_vm0, %v3973_v28  ;;  %3252 = vmatmul.mubr.msk.bf16.gmra.mrb[4].mxu1 %vm559_vm0, %v3973_v28  ;;  %v917_v63 = vld [vmem:[%s5654_s4 + $0xf8] sm:$0xff]  ;;  %v927_v2 = vld [vmem:[%s5654_s4 + $0x148] sm:$0xff]  ;;  %v912_v4 = vld [vmem:[%s5654_s4 + $0xd0] sm:$0xff]  ;;  %v4552_v5 = vpack.c.bf16 %v922_v61, %v918_v58 }
  0x30   : > { %636 = vmatprep.mubr.bf16.mxu0 %v4284_v10  ;;  %749 = vmatprep.mubr.bf16.mxu1 %v4284_v10  ;;  %v4539_v1 = vpack.c.bf16 %v917_v63, %v913_v62  ;;  %v931_v3 = vld [vmem:[%s5654_s4 + $0x168] sm:$0xff]  ;;  %v916_v6 = vld [vmem:[%s5654_s4 + $0xf0] sm:$0xff]  ;;  %v926_v7 = vld [vmem:[%s5654_s4 + $0x140] sm:$0xff] }
  0x31   : > { %3374 = vmatpush1.bf16.msra.mxu0 %v4469_v42  ;;  %3402 = vmatpush1.bf16.msra.mxu1 %v4484_v47  ;;  %v930_v8 = vld [vmem:[%s5654_s4 + $0x160] sm:$0xff]  ;;  %v4565_v9 = vpack.c.bf16 %v931_v3, %v927_v2  ;;  %v4567_v11 = vpack.c.bf16 %v916_v6, %v912_v4  ;;  %v921_v12 = vld [vmem:[%s5654_s4 + $0x118] sm:$0xff]  ;;  %v935_v15 = vld [vmem:[%s5654_s4 + $0x188] sm:$0xff] }
  0x32   : > { %3376 = vmatprep.subr.bf16.mxu0 %v4482_v46  ;;  %3404 = vmatprep.subr.bf16.mxu1 %v4502_v52  ;;  %v925_v13 = vld [vmem:[%s5654_s4 + $0x138] sm:$0xff]  ;;  %v939_v16 = vld [vmem:[%s5654_s4 + $0x1a8] sm:$0xff]  ;;  %v920_v17 = vld [vmem:[%s5654_s4 + $0x110] sm:$0xff]  ;;  %v4595_v21 = vpack.c.bf16 %v930_v8, %v926_v7  ;;  %v5662_v7 = vmov 0.0  }
  0x33   : > { %v4577_v14 = vpack.c.bf16 %v925_v13, %v921_v12  ;;  %v924_v20 = vld [vmem:[%s5654_s4 + $0x130] sm:$0xff]  ;;  %v934_v24 = vld [vmem:[%s5654_s4 + $0x180] sm:$0xff]  ;;  %v929_v26 = vld [vmem:[%s5654_s4 + $0x158] sm:$0xff]  ;;  %v4610_v28 = vpack.c.bf16 %v939_v16, %v935_v15  ;;  %v479_v12 = vlaneseq }
  0x34   : > { %v4597_v22 = vpack.c.bf16 %v924_v20, %v920_v17  ;;  %v938_v25 = vld [vmem:[%s5654_s4 + $0x1a0] sm:$0xff]  ;;  %v933_v30 = vld [vmem:[%s5654_s4 + $0x178] sm:$0xff]  ;;  %v928_v31 = vld [vmem:[%s5654_s4 + $0x150] sm:$0xff] }
  0x35   : > { %3378 = vmatpush1.bf16.msra.mxu0 %v4512_v55  ;;  %3406 = vmatpush1.bf16.msra.mxu1 %v4527_v60  ;;  %v932_v32 = vld [vmem:[%s5654_s4 + $0x170] sm:$0xff]  ;;  %v3975_v34 = vld [vmem:[%s4385_s15 + $0x18] sm:$0xff]   ;;  %v4622_v35 = vpack.c.bf16 %v933_v30, %v929_v26  ;;  %v943_v36 = vld [vmem:[%s5654_s4 + $0x1c8] sm:$0xff]  ;;  %v4635_v41 = vpack.c.bf16 %v938_v25, %v934_v24  ;;  %v4760_v13 = vshrl.u32 %v479_v12, 7 }
  0x36   : > { %3380 = vmatprep.subr.bf16.mxu0 %v4525_v59  ;;  %3408 = vmatprep.subr.bf16.mxu1 %v4539_v1  ;;  %v947_v38 = vld [vmem:[%s5654_s4 + $0x1e8] sm:$0xff]  ;;  %v937_v39 = vld [vmem:[%s5654_s4 + $0x198] sm:$0xff]  ;;  %v4637_v43 = vpack.c.bf16 %v932_v32, %v928_v31  ;;  %v942_v45 = vld [vmem:[%s5654_s4 + $0x1c0] sm:$0xff] }
  0x37   : > { %3245 = vmatmul.mubr.msk.bf16.gmra.mrb[8].mxu0 %vm559_vm0, %v3974_v0  ;;  %3253 = vmatmul.mubr.msk.bf16.gmra.mrb[8].mxu1 %vm559_vm0, %v3974_v0  ;;  %v941_v44 = vld [vmem:[%s5654_s4 + $0x1b8] sm:$0xff]  ;;  %v4647_v48 = vpack.c.bf16 %v947_v38, %v943_v36  ;;  %v946_v50 = vld [vmem:[%s5654_s4 + $0x1e0] sm:$0xff]  ;;  %v936_v51 = vld [vmem:[%s5654_s4 + $0x190] sm:$0xff]  ;;  %5666 = vst [vmem:[#allocation4_spill] sm:$0xff] %v4760_v13  ;;  %v5661_v26 = vsub.s32 0, %v4760_v13  ;;  %v5659_v31 = vsub.s32 2, %v4760_v13 }
  0x38   : > { %646 = vmatprep.mubr.bf16.mxu0 %v4284_v10  ;;  %759 = vmatprep.mubr.bf16.mxu1 %v4284_v10  ;;  %v4649_v49 = vpack.c.bf16 %v941_v44, %v937_v39  ;;  %v940_v53 = vld [vmem:[%s5654_s4 + $0x1b0] sm:$0xff]  ;;  %v945_v54 = vld [vmem:[%s5654_s4 + $0x1d8] sm:$0xff]  ;;  %v4672_v57 = vpack.c.bf16 %v946_v50, %v942_v45  ;;  %v3976_v0 = vld [vmem:[%s4385_s15 + $0x20] sm:$0xff]   ;;  %v5660_v36 = vsub.s32 1, %v4760_v13  ;;  %v493_v38 = vsub.s32 3, %v4760_v13 }
  0x39   : > { %3382 = vmatpush1.bf16.msra.mxu0 %v4552_v5  ;;  %3410 = vmatpush1.bf16.msra.mxu1 %v4567_v11  ;;  %v949_v56 = vld [vmem:[%s5654_s4 + $0x1f8] sm:$0xff]  ;;  %v4674_v58 = vpack.c.bf16 %v940_v53, %v936_v51  ;;  %v944_v62 = vld [vmem:[%s5654_s4 + $0x1d0] sm:$0xff]  ;;  %v3977_v3 = vld [vmem:[%s4385_s15 + $0x28] sm:$0xff]  }
  0x3a   : > { %3384 = vmatprep.subr.bf16.mxu0 %v4565_v9  ;;  %3412 = vmatprep.subr.bf16.mxu1 %v4577_v14  ;;  %v4678_v61 = vpack.c.bf16 %v949_v56, %v945_v54  ;;  %v948_v63 = vld [vmem:[%s5654_s4 + $0x1f0] sm:$0xff]  ;;  %v3979_v6 = vld [vmem:[%s4385_s15 + $0x38] sm:$0xff]   ;;  %v875_v8 = vld [vmem:[%s441_s16 + $0x8] sm:$0xff] }
  0x3b   : > { %v4689_v2 = vpack.c.bf16 %v948_v63, %v944_v62  ;;  %v3978_v4 = vld [vmem:[%s4385_s15 + $0x30] sm:$0xff]  }
  0x3d   : > { %3386 = vmatpush1.bf16.msra.mxu0 %v4595_v21  ;;  %3414 = vmatpush1.bf16.msra.mxu1 %v4597_v22 }
  0x3e   : > { %3388 = vmatprep.subr.bf16.mxu0 %v4610_v28  ;;  %3416 = vmatprep.subr.bf16.mxu1 %v4622_v35 }
  0x3f   : > { %3246 = vmatmul.mubr.msk.bf16.gmra.mrb[12].mxu0 %vm559_vm0, %v3975_v34  ;;  %3254 = vmatmul.mubr.msk.bf16.gmra.mrb[12].mxu1 %vm559_vm0, %v3975_v34  ;;  %v477_v34 = vld [vmem:[%s5655_s5] sm:$0xf] }
  0x40   : > { %656 = vmatprep.mubr.bf16.mxu0 %v4284_v10  ;;  %769 = vmatprep.mubr.bf16.mxu1 %v4284_v10  ;;  %v4787_v39 = vrot.slane %v477_v34, %v5661_v26  ;;  %v4791_v44 = vrot.slane %v477_v34, %v5659_v31  ;;  %v4795_v45 = vrot.slane %v477_v34, %v5660_v36 }
  0x41   : > { %3390 = vmatpush1.bf16.msra.mxu0 %v4635_v41  ;;  %3418 = vmatpush1.bf16.msra.mxu1 %v4637_v43  ;;  %v4797_v51 = vrot.slane %v477_v34, %v493_v38 }
  0x42   : > { %3392 = vmatprep.subr.bf16.mxu0 %v4647_v48  ;;  %3420 = vmatprep.subr.bf16.mxu1 %v4649_v49 }
  0x45   : > { %3394 = vmatpush1.bf16.msra.mxu0 %v4672_v57  ;;  %3422 = vmatpush1.bf16.msra.mxu1 %v4674_v58 }
  0x46   : > { %3424 = vmatprep.subr.bf16.mxu1 %v4678_v61  ;;  %3428 = vmatprep.subr.bf16.mxu0 %v4397_v18 }
  0x47   : > { %3247 = vmatmul.mubr.msk.bf16.gmra.mrb[16].mxu0 %vm559_vm0, %v3976_v0  ;;  %3255 = vmatmul.mubr.msk.bf16.gmra.mrb[16].mxu1 %vm559_vm0, %v3976_v0 }
  0x48   : > { %666 = vmatprep.mubr.bf16.mxu0 %v4284_v10  ;;  %779 = vmatprep.mubr.bf16.mxu1 %v4284_v10 }
  0x49   : > { %3426 = vmatpush1.bf16.msra.mxu1 %v4689_v2 }
  0x4a   : > { %3460 = vmatprep.subr.bf16.mxu1 %v4425_v27 }
  0x4f   : > { %3248 = vmatmul.mubr.msk.bf16.gmra.mrb[20].mxu0 %vm559_vm0, %v3977_v3  ;;  %3256 = vmatmul.mubr.msk.bf16.gmra.mrb[20].mxu1 %vm559_vm0, %v3977_v3 }
  0x50   : > { %676 = vmatprep.mubr.bf16.mxu0 %v4284_v10  ;;  %789 = vmatprep.mubr.bf16.mxu1 %v4284_v10 }
  0x57   : > { %3249 = vmatmul.mubr.msk.bf16.gmra.mrb[24].mxu0 %vm559_vm0, %v3978_v4  ;;  %3257 = vmatmul.mubr.msk.bf16.gmra.mrb[24].mxu1 %vm559_vm0, %v3978_v4 }
  0x58   : > { %686 = vmatprep.mubr.bf16.mxu0 %v4284_v10  ;;  %799 = vmatprep.mubr.bf16.mxu1 %v4284_v10  ;;  %v874_v10 = vld [vmem:[%s441_s16] sm:$0xff] }
  0x5f   : > { %3250 = vmatmul.mubr.msk.bf16.gmra.mrb[28].mxu0 %vm559_vm0, %v3979_v6  ;;  %3258 = vmatmul.mubr.msk.bf16.gmra.mrb[28].mxu1 %vm559_vm0, %v3979_v6 }
  0x60   : > { %1014 = vmatprep.mubr.f32.mxu0 %v5662_v7  ;;  %1091 = vmatprep.mubr.f32.mxu1 %v5662_v7 }
  0x67   : > { %1015 = vmatmul.mubr.f32.vlgmr.msra.gmra.mrb[32].mxu0 %v874_v10  ;;  %1092 = vmatmul.mubr.f32.vlgmr.msra.gmra.mrb[32].mxu1 %v874_v10 }
  0x68   : > { %1020 = vmatprep.mubr.f32.mxu0 %v5662_v7  ;;  %1097 = vmatprep.mubr.f32.mxu1 %v5662_v7 }
  0x69   : > { %3430 = vmatpush1.bf16.msra.mxu0 %v4399_v19  ;;  %3462 = vmatpush1.bf16.msra.mxu1 %v4454_v37 }
  0x6a   : > { %3432 = vmatprep.subr.bf16.mxu0 %v4412_v23  ;;  %3464 = vmatprep.subr.bf16.mxu1 %v4462_v40 }
  0x6b   : > { %1021 = vmatmul.mubr.f32.gmra.mrb[34].mxu0 %v875_v8  ;;  %1098 = vmatmul.mubr.f32.gmra.mrb[34].mxu1 %v875_v8 }
  0x6c   : > { %1233 = vmatprep.mubr.f32.mxu0 %v5662_v7  ;;  %1310 = vmatprep.mubr.f32.mxu1 %v5662_v7 }
  0x6d   : > { %3434 = vmatpush1.bf16.msra.mxu0 %v4430_v29  ;;  %3466 = vmatpush1.bf16.msra.mxu1 %v4484_v47 }
  0x6e   : > { %3436 = vmatprep.subr.bf16.mxu0 %v4443_v33  ;;  %3468 = vmatprep.subr.bf16.mxu1 %v4502_v52 }
  0x71   : > { %3438 = vmatpush1.bf16.msra.mxu0 %v4469_v42  ;;  %3470 = vmatpush1.bf16.msra.mxu1 %v4527_v60 }
  0x72   : > { %3440 = vmatprep.subr.bf16.mxu0 %v4482_v46  ;;  %3472 = vmatprep.subr.bf16.mxu1 %v4539_v1 }
  0x75   : > { %3442 = vmatpush1.bf16.msra.mxu0 %v4512_v55  ;;  %3474 = vmatpush1.bf16.msra.mxu1 %v4567_v11 }
  0x76   : > { %3444 = vmatprep.subr.bf16.mxu0 %v4525_v59  ;;  %3476 = vmatprep.subr.bf16.mxu1 %v4577_v14 }
  0x79   : > { %3446 = vmatpush1.bf16.msra.mxu0 %v4552_v5  ;;  %3478 = vmatpush1.bf16.msra.mxu1 %v4597_v22 }
  0x7a   : > { %3448 = vmatprep.subr.bf16.mxu0 %v4565_v9  ;;  %3480 = vmatprep.subr.bf16.mxu1 %v4622_v35 }
  0x7d   : > { %3450 = vmatpush1.bf16.msra.mxu0 %v4595_v21  ;;  %3482 = vmatpush1.bf16.msra.mxu1 %v4637_v43 }
  0x7e   : > { %3452 = vmatprep.subr.bf16.mxu0 %v4610_v28  ;;  %3484 = vmatprep.subr.bf16.mxu1 %v4649_v49 }
  0x81   : > { %3454 = vmatpush1.bf16.msra.mxu0 %v4635_v41  ;;  %3486 = vmatpush1.bf16.msra.mxu1 %v4674_v58 }
  0x82   : > { %3456 = vmatprep.subr.bf16.mxu0 %v4647_v48  ;;  %3488 = vmatprep.subr.bf16.mxu1 %v4678_v61 }
  0x85   : > { %3458 = vmatpush1.bf16.msra.mxu0 %v4672_v57  ;;  %3490 = vmatpush1.bf16.msra.mxu1 %v4689_v2 }
  0x86   : > { %3492 = vmatprep.subr.bf16.mxu0 %v4397_v18  ;;  %3524 = vmatprep.subr.bf16.mxu1 %v4425_v27 }
  0xfa   : > { %v4762_v15 = vpop.f32.mrb[0].mxu0  ;;  %v4764_v16 = vpop.f32.mrb[0].mxu1 }
  0xfb   : > { %v4766_v17 = vpop.f32.mrb[1].mxu0  ;;  %v4768_v20 = vpop.f32.mrb[1].mxu1 }
  0xfc   : > { %v4770_v24 = vpop.f32.mrb[2].mxu0  ;;  %v4772_v25 = vpop.f32.mrb[2].mxu1 }
  0xfd   : > { %v4775_v30 = vpop.f32.mrb[3].mxu0  ;;  %v4778_v32 = vpop.f32.mrb[3].mxu1 }
 0x102   : > { %v628_v50 = vpop.f32.mrb[4].mxu0  ;;  %v741_v53 = vpop.f32.mrb[4].mxu1 }
 0x103   : > { %v4800_v54 = vadd.f32 %v628_v50, %v4787_v39  ;;  %v630_v56 = vpop.f32.mrb[5].mxu0  ;;  %v4803_v62 = vadd.f32 %v741_v53, %v4791_v44  ;;  %v743_v63 = vpop.f32.mrb[5].mxu1 }
 0x104   : > { %v4806_v0 = vadd.f32 %v630_v56, %v4795_v45  ;;  %v632_v3 = vpop.f32.mrb[6].mxu0  ;;  %v4809_v4 = vadd.f32 %v743_v63, %v4797_v51  ;;  %v745_v6 = vpop.f32.mrb[6].mxu1 }
 0x105   : > { %v4812_v10 = vadd.f32 %v632_v3, %v4787_v39  ;;  %v634_v8 = vpop.f32.mrb[7].mxu0  ;;  %v4815_v12 = vadd.f32 %v745_v6, %v4791_v44  ;;  %v747_v34 = vpop.f32.mrb[7].mxu1 }
 0x106   : > { %v4818_v38 = vadd.f32 %v634_v8, %v4795_v45  ;;  %v4821_v50 = vadd.f32 %v747_v34, %v4797_v51 }
 0x108   : > { %5667 = vst [vmem:[#allocation5_spill] sm:$0xff] %v4818_v38  ;;  %5668 = vst [vmem:[#allocation6_spill] sm:$0xff] %v4821_v50 }
 0x10a   : > { %v638_v53 = vpop.f32.mrb[8].mxu0  ;;  %v751_v56 = vpop.f32.mrb[8].mxu1 }
 0x10b   : > { %v4824_v63 = vadd.f32 %v638_v53, %v4787_v39  ;;  %v640_v31 = vpop.f32.mrb[9].mxu0  ;;  %v4827_v3 = vadd.f32 %v751_v56, %v4791_v44  ;;  %v753_v36 = vpop.f32.mrb[9].mxu1 }
 0x10c   : > { %v4830_v6 = vadd.f32 %v640_v31, %v4795_v45  ;;  %v642_v26 = vpop.f32.mrb[10].mxu0  ;;  %v4833_v8 = vadd.f32 %v753_v36, %v4797_v51  ;;  %v755_v7 = vpop.f32.mrb[10].mxu1 }
 0x10d   : > { %5669 = vst [vmem:[#allocation7_spill] sm:$0xff] %v4824_v63  ;;  %5670 = vst [vmem:[#allocation8_spill] sm:$0xff] %v4827_v3  ;;  %v4836_v34 = vadd.f32 %v642_v26, %v4787_v39  ;;  %v644_v13 = vpop.f32.mrb[11].mxu0  ;;  %v4839_v53 = vadd.f32 %v755_v7, %v4791_v44  ;;  %v757_v63 = vpop.f32.mrb[11].mxu1 }
 0x10e   : > { %5671 = vst [vmem:[#allocation9_spill] sm:$0xff] %v4830_v6  ;;  %5672 = vst [vmem:[#allocation10_spill] sm:$0xff] %v4833_v8  ;;  %v4842_v56 = vadd.f32 %v644_v13, %v4795_v45  ;;  %v4845_v3 = vadd.f32 %v757_v63, %v4797_v51 }
 0x10f   : > { %5673 = vst [vmem:[#allocation11_spill] sm:$0xff] %v4836_v34  ;;  %5674 = vst [vmem:[#allocation12_spill] sm:$0xff] %v4839_v53 }
 0x110   : > { %5675 = vst [vmem:[#allocation13_spill] sm:$0xff] %v4842_v56  ;;  %5676 = vst [vmem:[#allocation14_spill] sm:$0xff] %v4845_v3 }
 0x112   : > { %v648_v31 = vpop.f32.mrb[12].mxu0  ;;  %v761_v6 = vpop.f32.mrb[12].mxu1 }
 0x113   : > { %v4848_v36 = vadd.f32 %v648_v31, %v4787_v39  ;;  %v650_v8 = vpop.f32.mrb[13].mxu0  ;;  %v4851_v26 = vadd.f32 %v761_v6, %v4791_v44  ;;  %v763_v34 = vpop.f32.mrb[13].mxu1 }
 0x114   : > { %v4854_v7 = vadd.f32 %v650_v8, %v4795_v45  ;;  %v652_v53 = vpop.f32.mrb[14].mxu0  ;;  %v4857_v13 = vadd.f32 %v763_v34, %v4797_v51  ;;  %v765_v56 = vpop.f32.mrb[14].mxu1 }
 0x115   : > { %5677 = vst [vmem:[#allocation15_spill] sm:$0xff] %v4848_v36  ;;  %5678 = vst [vmem:[#allocation16_spill] sm:$0xff] %v4851_v26  ;;  %v4860_v63 = vadd.f32 %v652_v53, %v4787_v39  ;;  %v654_v3 = vpop.f32.mrb[15].mxu0  ;;  %v4863_v31 = vadd.f32 %v765_v56, %v4791_v44  ;;  %v767_v36 = vpop.f32.mrb[15].mxu1 }
 0x116   : > { %5679 = vst [vmem:[#allocation17_spill] sm:$0xff] %v4854_v7  ;;  %5680 = vst [vmem:[#allocation18_spill] sm:$0xff] %v4857_v13  ;;  %v4866_v6 = vadd.f32 %v654_v3, %v4795_v45  ;;  %v4869_v26 = vadd.f32 %v767_v36, %v4797_v51 }
 0x117   : > { %5681 = vst [vmem:[#allocation19_spill] sm:$0xff] %v4860_v63  ;;  %5682 = vst [vmem:[#allocation20_spill] sm:$0xff] %v4863_v31 }
 0x118   : > { %5683 = vst [vmem:[#allocation21_spill] sm:$0xff] %v4866_v6  ;;  %5684 = vst [vmem:[#allocation22_spill] sm:$0xff] %v4869_v26 }
 0x11a   : > { %v658_v8 = vpop.f32.mrb[16].mxu0  ;;  %v771_v7 = vpop.f32.mrb[16].mxu1 }
 0x11b   : > { %v4872_v34 = vadd.f32 %v658_v8, %v4787_v39  ;;  %v660_v13 = vpop.f32.mrb[17].mxu0  ;;  %v4875_v53 = vadd.f32 %v771_v7, %v4791_v44  ;;  %v773_v63 = vpop.f32.mrb[17].mxu1 }
 0x11c   : > { %v4878_v56 = vadd.f32 %v660_v13, %v4795_v45  ;;  %v662_v31 = vpop.f32.mrb[18].mxu0  ;;  %v4881_v3 = vadd.f32 %v773_v63, %v4797_v51  ;;  %v775_v6 = vpop.f32.mrb[18].mxu1 }
 0x11d   : > { %5685 = vst [vmem:[#allocation23_spill] sm:$0xff] %v4872_v34  ;;  %5686 = vst [vmem:[#allocation24_spill] sm:$0xff] %v4875_v53  ;;  %v4884_v36 = vadd.f32 %v662_v31, %v4787_v39  ;;  %v664_v26 = vpop.f32.mrb[19].mxu0  ;;  %v4887_v8 = vadd.f32 %v775_v6, %v4791_v44  ;;  %v777_v34 = vpop.f32.mrb[19].mxu1 }
 0x11e   : > { %5687 = vst [vmem:[#allocation25_spill] sm:$0xff] %v4878_v56  ;;  %5688 = vst [vmem:[#allocation26_spill] sm:$0xff] %v4881_v3  ;;  %v4890_v7 = vadd.f32 %v664_v26, %v4795_v45  ;;  %v4893_v53 = vadd.f32 %v777_v34, %v4797_v51 }
 0x11f   : > { %5689 = vst [vmem:[#allocation27_spill] sm:$0xff] %v4884_v36  ;;  %5690 = vst [vmem:[#allocation28_spill] sm:$0xff] %v4887_v8 }
 0x120   : > { %5691 = vst [vmem:[#allocation29_spill] sm:$0xff] %v4890_v7  ;;  %5692 = vst [vmem:[#allocation30_spill] sm:$0xff] %v4893_v53 }
 0x122   : > { %v668_v13 = vpop.f32.mrb[20].mxu0  ;;  %v781_v56 = vpop.f32.mrb[20].mxu1 }
 0x123   : > { %v4896_v63 = vadd.f32 %v668_v13, %v4787_v39  ;;  %v670_v3 = vpop.f32.mrb[21].mxu0  ;;  %v4899_v31 = vadd.f32 %v781_v56, %v4791_v44  ;;  %v783_v36 = vpop.f32.mrb[21].mxu1 }
 0x124   : > { %v4902_v6 = vadd.f32 %v670_v3, %v4795_v45  ;;  %v672_v8 = vpop.f32.mrb[22].mxu0  ;;  %v4905_v26 = vadd.f32 %v783_v36, %v4797_v51  ;;  %v785_v7 = vpop.f32.mrb[22].mxu1 }
 0x125   : > { %5693 = vst [vmem:[#allocation31_spill] sm:$0xff] %v4896_v63  ;;  %5694 = vst [vmem:[#allocation32_spill] sm:$0xff] %v4899_v31  ;;  %v4908_v34 = vadd.f32 %v672_v8, %v4787_v39  ;;  %v674_v53 = vpop.f32.mrb[23].mxu0  ;;  %v4911_v13 = vadd.f32 %v785_v7, %v4791_v44  ;;  %v787_v63 = vpop.f32.mrb[23].mxu1 }
 0x126   : > { %5695 = vst [vmem:[#allocation33_spill] sm:$0xff] %v4902_v6  ;;  %5696 = vst [vmem:[#allocation34_spill] sm:$0xff] %v4905_v26  ;;  %v4914_v56 = vadd.f32 %v674_v53, %v4795_v45  ;;  %v4917_v31 = vadd.f32 %v787_v63, %v4797_v51 }
 0x127   : > { %5697 = vst [vmem:[#allocation35_spill] sm:$0xff] %v4908_v34  ;;  %5698 = vst [vmem:[#allocation36_spill] sm:$0xff] %v4911_v13 }
 0x128   : > { %5699 = vst [vmem:[#allocation37_spill] sm:$0xff] %v4914_v56  ;;  %5700 = vst [vmem:[#allocation38_spill] sm:$0xff] %v4917_v31 }
 0x12a   : > { %v678_v3 = vpop.f32.mrb[24].mxu0  ;;  %v791_v6 = vpop.f32.mrb[24].mxu1 }
 0x12b   : > { %v4920_v36 = vadd.f32 %v678_v3, %v4787_v39  ;;  %v680_v26 = vpop.f32.mrb[25].mxu0  ;;  %v4923_v8 = vadd.f32 %v791_v6, %v4791_v44  ;;  %v793_v34 = vpop.f32.mrb[25].mxu1 }
 0x12c   : > { %v4926_v7 = vadd.f32 %v680_v26, %v4795_v45  ;;  %v682_v13 = vpop.f32.mrb[26].mxu0  ;;  %v4929_v53 = vadd.f32 %v793_v34, %v4797_v51  ;;  %v795_v56 = vpop.f32.mrb[26].mxu1 }
 0x12d   : > { %5701 = vst [vmem:[#allocation39_spill] sm:$0xff] %v4920_v36  ;;  %5702 = vst [vmem:[#allocation40_spill] sm:$0xff] %v4923_v8  ;;  %v4932_v63 = vadd.f32 %v682_v13, %v4787_v39  ;;  %v684_v31 = vpop.f32.mrb[27].mxu0  ;;  %v4935_v3 = vadd.f32 %v795_v56, %v4791_v44  ;;  %v797_v36 = vpop.f32.mrb[27].mxu1 }
 0x12e   : > { %5703 = vst [vmem:[#allocation41_spill] sm:$0xff] %v4926_v7  ;;  %5704 = vst [vmem:[#allocation42_spill] sm:$0xff] %v4929_v53  ;;  %v4938_v6 = vadd.f32 %v684_v31, %v4795_v45  ;;  %v4941_v8 = vadd.f32 %v797_v36, %v4797_v51 }
 0x12f   : > { %5705 = vst [vmem:[#allocation43_spill] sm:$0xff] %v4932_v63  ;;  %5706 = vst [vmem:[#allocation44_spill] sm:$0xff] %v4935_v3 }
 0x130   : > { %5707 = vst [vmem:[#allocation45_spill] sm:$0xff] %v4938_v6  ;;  %5708 = vst [vmem:[#allocation46_spill] sm:$0xff] %v4941_v8 }
 0x132   : > { %v688_v26 = vpop.f32.mrb[28].mxu0  ;;  %v801_v7 = vpop.f32.mrb[28].mxu1 }
 0x133   : > { %v4944_v34 = vadd.f32 %v688_v26, %v4787_v39  ;;  %v690_v53 = vpop.f32.mrb[29].mxu0  ;;  %v4947_v13 = vadd.f32 %v801_v7, %v4791_v44  ;;  %v803_v63 = vpop.f32.mrb[29].mxu1 }
 0x134   : > { %v4950_v56 = vadd.f32 %v690_v53, %v4795_v45  ;;  %v692_v3 = vpop.f32.mrb[30].mxu0  ;;  %v4953_v31 = vadd.f32 %v803_v63, %v4797_v51  ;;  %v805_v6 = vpop.f32.mrb[30].mxu1  ;;  %v619_v53 = vadd.f32 %v4762_v15, %v4787_v39  ;;  %v732_v63 = vadd.f32 %v4764_v16, %v4791_v44 }
 0x135   : > { %5709 = vst [vmem:[#allocation47_spill] sm:$0xff] %v4944_v34  ;;  %5710 = vst [vmem:[#allocation48_spill] sm:$0xff] %v4947_v13  ;;  %v4956_v36 = vadd.f32 %v692_v3, %v4787_v39  ;;  %v694_v8 = vpop.f32.mrb[31].mxu0  ;;  %v4959_v26 = vadd.f32 %v805_v6, %v4791_v44  ;;  %v807_v34 = vpop.f32.mrb[31].mxu1  ;;  %v621_v3 = vadd.f32 %v4766_v17, %v4795_v45 }
 0x136   : > { %5711 = vst [vmem:[#allocation49_spill] sm:$0xff] %v4950_v56  ;;  %5712 = vst [vmem:[#allocation50_spill] sm:$0xff] %v4953_v31  ;;  %v4962_v7 = vadd.f32 %v694_v8, %v4795_v45  ;;  %v4965_v13 = vadd.f32 %v807_v34, %v4797_v51  ;;  %v734_v6 = vadd.f32 %v4768_v20, %v4797_v51 }
 0x137   : > { %5713 = vst [vmem:[#allocation51_spill] sm:$0xff] %v4956_v36  ;;  %5714 = vst [vmem:[#allocation52_spill] sm:$0xff] %v4959_v26  ;;  %v623_v15 = vadd.f32 %v4770_v24, %v4787_v39  ;;  %v736_v16 = vadd.f32 %v4772_v25, %v4791_v44  ;;  %v625_v17 = vadd.f32 %v4775_v30, %v4795_v45 }
 0x138   : > { %5715 = vst [vmem:[#allocation53_spill] sm:$0xff] %v4962_v7  ;;  %5716 = vst [vmem:[#allocation54_spill] sm:$0xff] %v4965_v13  ;;  %v738_v20 = vadd.f32 %v4778_v32, %v4797_v51 }
 0x13a   : > { %v1016_v26 = vpop.f32.mrb[32].mxu0  ;;  %v1093_v36 = vpop.f32.mrb[32].mxu1 }
 0x13b   : > { %v1104_v31 = vadd.f32 %v1016_v26, %v619_v53  ;;  %v1106_v8 = vadd.f32 %v1093_v36, %v732_v63  ;;  %v1018_v7 = vpop.f32.mrb[33].mxu0  ;;  %v1095_v56 = vpop.f32.mrb[33].mxu1 }
 0x13c   : > { %v1105_v34 = vadd.f32 %v1018_v7, %v621_v3  ;;  %v1107_v13 = vadd.f32 %v1095_v56, %v734_v6 }
 0x13d   : > { %v3259_v50 = vmul.f32 -1.442695, %v1104_v31  ;;  %v3261_v44 = vmul.f32 -1.442695, %v1106_v8 }
 0x13e   : > { %v3260_v38 = vmul.f32 -1.442695, %v1105_v34  ;;  %v1022_v26 = vpop.f32.mrb[34].mxu0  ;;  %v1099_v36 = vpop.f32.mrb[34].mxu1 }
 0x13f   : > { %3980 = vpow2.f32 %v3259_v50  ;;  %v1108_v53 = vadd.f32 %v1022_v26, %v623_v15  ;;  %v1110_v7 = vadd.f32 %v1099_v36, %v736_v16  ;;  %v1024_v56 = vpop.f32.mrb[35].mxu0  ;;  %v1101_v63 = vpop.f32.mrb[35].mxu1  ;;  %v876_v16 = vld [vmem:[%s447_s20] sm:$0xff] }
 0x140   : > { %v1109_v3 = vadd.f32 %v1024_v56, %v625_v17  ;;  %v1111_v24 = vadd.f32 %v1101_v63, %v738_v20  ;;  %3982 = vpow2.f32 %v3260_v38  ;;  %v877_v63 = vld [vmem:[%s447_s20 + $0x8] sm:$0xff] }
 0x141   : > { %v3262_v39 = vmul.f32 -1.442695, %v1108_v53  ;;  %v3264_v51 = vmul.f32 -1.442695, %v1110_v7 }
 0x142   : > { %v3263_v25 = vmul.f32 -1.442695, %v1109_v3 }
 0x143   : > { %3984 = vpow2.f32 %v3262_v39 }
 0x144   : > { %3986 = vpow2.f32 %v3263_v25 }
 0x145   : > { %3988 = vtanh.f32 %v1107_v13 }
 0x146   : > { %3990 = vpow2.f32 %v3261_v44 }
 0x149   : > { %v3981_v30 = vpop.eup %3980 }
 0x14a   : > { %v1130_v45 = vadd.f32 1.0, %v3981_v30  ;;  %v3983_v32 = vpop.eup %3982 }
 0x14b   : > { %v1131_v50 = vadd.f32 1.0, %v3983_v32 }
 0x14c   : > { %3992 = vrcp.f32 %v1130_v45 }
 0x14d   : > { %v3985_v31 = vpop.eup %3984  ;;  %3994 = vtanh.f32 %v1111_v24 }
 0x14e   : > { %3996 = vrcp.f32 %v1131_v50  ;;  %v1133_v6 = vadd.f32 1.0, %v3985_v31  ;;  %v3987_v34 = vpop.eup %3986 }
 0x14f   : > { %3998 = vpow2.f32 %v3264_v51  ;;  %v1134_v38 = vadd.f32 1.0, %v3987_v34  ;;  %v3989_v13 = vpop.eup %3988 }
 0x150   : > { %4000 = vrcp.f32 %v1133_v6  ;;  %v3991_v8 = vpop.eup %3990  ;;  %v5717_v6 = vmov 0.0  }
 0x151   : > { %4002 = vrcp.f32 %v1134_v38  ;;  %v1132_v36 = vadd.f32 1.0, %v3991_v8 }
 0x153   : > { %4004 = vrcp.f32 %v1132_v36 }
 0x156   : > { %v3993_v15 = vpop.eup %3992 }
 0x157   : > { %v3995_v17 = vpop.eup %3994  ;;  %v1152_v20 = vmul.f32 %v3993_v15, %v3989_v13 }
 0x158   : > { %v3997_v26 = vpop.eup %3996 }
 0x159   : > { %v3999_v53 = vpop.eup %3998  ;;  %v1150_v7 = vmul.f32 %v3997_v26, %v876_v16 }
 0x15a   : > { %v4001_v56 = vpop.eup %4000  ;;  %v1135_v25 = vadd.f32 1.0, %v3999_v53 }
 0x15b   : > { %v4988_v3 = vadd.f32 %v1152_v20, %v1150_v7  ;;  %v1153_v24 = vmul.f32 %v4001_v56, %v3995_v17  ;;  %v4003_v39 = vpop.eup %4002 }
 0x15c   : > { %v1151_v44 = vmul.f32 %v4003_v39, %v877_v63 }
 0x15d   : > { %4006 = vtanh.f32 %v4988_v3  ;;  %v4005_v45 = vpop.eup %4004 }
 0x15e   : > { %v4991_v30 = vadd.f32 %v1153_v24, %v1151_v44  ;;  %4008 = vrcp.f32 %v1135_v25 }
 0x160   : > { %4010 = vtanh.f32 %v4991_v30 }
 0x167   : > { %v4007_v32 = vpop.eup %4006 }
 0x168   : > { %v1158_v51 = vmul.f32 %v4007_v32, %v4005_v45  ;;  %v4009_v50 = vpop.eup %4008 }
 0x16a   : > { %1234 = vmatmul.mubr.f32.vlgmr.msra.gmra.mrb[36].mxu0 %v1158_v51  ;;  %1311 = vmatmul.mubr.f32.vlgmr.msra.gmra.mrb[36].mxu1 %v1158_v51  ;;  %v4011_v31 = vpop.eup %4010 }
 0x16b   : > { %1239 = vmatprep.mubr.f32.mxu0 %v5717_v6  ;;  %1316 = vmatprep.mubr.f32.mxu1 %v5717_v6  ;;  %v1159_v34 = vmul.f32 %v4011_v31, %v4009_v50 }
 0x16c   : > { %3494 = vmatpush1.bf16.msra.mxu0 %v4399_v19  ;;  %3526 = vmatpush1.bf16.msra.mxu1 %v4454_v37 }
 0x16d   : > { %3496 = vmatprep.subr.bf16.mxu0 %v4412_v23  ;;  %3528 = vmatprep.subr.bf16.mxu1 %v4462_v40 }
 0x16e   : > { %1240 = vmatmul.mubr.f32.gmra.mrb[38].mxu0 %v1159_v34  ;;  %1317 = vmatmul.mubr.f32.gmra.mrb[38].mxu1 %v1159_v34 }
 0x16f   : > { %1452 = vmatprep.mubr.f32.mxu0 %v5717_v6  ;;  %1529 = vmatprep.mubr.f32.mxu1 %v5717_v6 }
 0x170   : > { %3498 = vmatpush1.bf16.msra.mxu0 %v4430_v29  ;;  %3530 = vmatpush1.bf16.msra.mxu1 %v4484_v47 }
 0x171   : > { %3500 = vmatprep.subr.bf16.mxu0 %v4443_v33  ;;  %3532 = vmatprep.subr.bf16.mxu1 %v4502_v52 }
 0x174   : > { %3502 = vmatpush1.bf16.msra.mxu0 %v4469_v42  ;;  %3534 = vmatpush1.bf16.msra.mxu1 %v4527_v60 }
 0x175   : > { %3504 = vmatprep.subr.bf16.mxu0 %v4482_v46  ;;  %3536 = vmatprep.subr.bf16.mxu1 %v4539_v1 }
 0x178   : > { %3506 = vmatpush1.bf16.msra.mxu0 %v4512_v55  ;;  %3538 = vmatpush1.bf16.msra.mxu1 %v4567_v11 }
 0x179   : > { %3508 = vmatprep.subr.bf16.mxu0 %v4525_v59  ;;  %3540 = vmatprep.subr.bf16.mxu1 %v4577_v14 }
 0x17c   : > { %3510 = vmatpush1.bf16.msra.mxu0 %v4552_v5  ;;  %3542 = vmatpush1.bf16.msra.mxu1 %v4597_v22 }
 0x17d   : > { %3512 = vmatprep.subr.bf16.mxu0 %v4565_v9  ;;  %3544 = vmatprep.subr.bf16.mxu1 %v4622_v35 }
 0x180   : > { %3514 = vmatpush1.bf16.msra.mxu0 %v4595_v21  ;;  %3546 = vmatpush1.bf16.msra.mxu1 %v4637_v43 }
 0x181   : > { %3516 = vmatprep.subr.bf16.mxu0 %v4610_v28  ;;  %3548 = vmatprep.subr.bf16.mxu1 %v4649_v49 }
 0x184   : > { %3518 = vmatpush1.bf16.msra.mxu0 %v4635_v41  ;;  %3550 = vmatpush1.bf16.msra.mxu1 %v4674_v58 }
 0x185   : > { %3520 = vmatprep.subr.bf16.mxu0 %v4647_v48  ;;  %3552 = vmatprep.subr.bf16.mxu1 %v4678_v61 }
 0x188   : > { %3522 = vmatpush1.bf16.msra.mxu0 %v4672_v57  ;;  %3554 = vmatpush1.bf16.msra.mxu1 %v4689_v2 }
 0x189   : > { %3556 = vmatprep.subr.bf16.mxu0 %v4397_v18  ;;  %3588 = vmatprep.subr.bf16.mxu1 %v4425_v27 }
 0x23d   : > { %v1235_v38 = vpop.f32.mrb[36].mxu0  ;;  %v1312_v13 = vpop.f32.mrb[36].mxu1 }
 0x23e   : > { %v1323_v8 = vadd.f32 %v1235_v38, %v4800_v54  ;;  %v1325_v15 = vadd.f32 %v1312_v13, %v4803_v62  ;;  %v1237_v16 = vpop.f32.mrb[37].mxu0  ;;  %v1314_v17 = vpop.f32.mrb[37].mxu1  ;;  %v5718_v54 = vld [vmem:[#allocation5_spill] sm:$0xff]  ;;  %v5719_v62 = vld [vmem:[#allocation6_spill] sm:$0xff] }
 0x23f   : > { %v1324_v20 = vadd.f32 %v1237_v16, %v4806_v0  ;;  %v1326_v26 = vadd.f32 %v1314_v17, %v4809_v4 }
 0x240   : > { %v3265_v36 = vmul.f32 -1.442695, %v1323_v8  ;;  %v3267_v4 = vmul.f32 -1.442695, %v1325_v15 }
 0x241   : > { %v3266_v53 = vmul.f32 -1.442695, %v1324_v20  ;;  %v1241_v7 = vpop.f32.mrb[38].mxu0  ;;  %v1318_v56 = vpop.f32.mrb[38].mxu1 }
 0x242   : > { %4012 = vpow2.f32 %v3265_v36  ;;  %v1327_v63 = vadd.f32 %v1241_v7, %v4812_v10  ;;  %v1329_v24 = vadd.f32 %v1318_v56, %v4815_v12  ;;  %v1243_v39 = vpop.f32.mrb[39].mxu0  ;;  %v1320_v25 = vpop.f32.mrb[39].mxu1 }
 0x243   : > { %v1328_v44 = vadd.f32 %v1243_v39, %v5718_v54  ;;  %v1330_v45 = vadd.f32 %v1320_v25, %v5719_v62  ;;  %4014 = vpow2.f32 %v3266_v53 }
 0x244   : > { %v3268_v32 = vmul.f32 -1.442695, %v1327_v63  ;;  %v3270_v10 = vmul.f32 -1.442695, %v1329_v24 }
 0x245   : > { %v3269_v0 = vmul.f32 -1.442695, %v1328_v44 }
 0x246   : > { %4016 = vpow2.f32 %v3268_v32 }
 0x247   : > { %4018 = vpow2.f32 %v3269_v0 }
 0x248   : > { %4020 = vtanh.f32 %v1326_v26 }
 0x249   : > { %4022 = vpow2.f32 %v3267_v4 }
 0x24c   : > { %v4013_v51 = vpop.eup %4012 }
 0x24d   : > { %v1349_v50 = vadd.f32 1.0, %v4013_v51  ;;  %v4015_v31 = vpop.eup %4014 }
 0x24e   : > { %v1350_v12 = vadd.f32 1.0, %v4015_v31  ;;  %v5720_v31 = vld [vmem:[#allocation7_spill] sm:$0xff] }
 0x24f   : > { %4024 = vrcp.f32 %v1349_v50 }
 0x250   : > { %v4017_v34 = vpop.eup %4016  ;;  %4026 = vtanh.f32 %v1330_v45 }
 0x251   : > { %4028 = vrcp.f32 %v1350_v12  ;;  %v1352_v38 = vadd.f32 1.0, %v4017_v34  ;;  %v4019_v13 = vpop.eup %4018  ;;  %v5721_v12 = vld [vmem:[#allocation8_spill] sm:$0xff] }
 0x252   : > { %4030 = vpow2.f32 %v3270_v10  ;;  %v1353_v8 = vadd.f32 1.0, %v4019_v13  ;;  %v4021_v16 = vpop.eup %4020 }
 0x253   : > { %4032 = vrcp.f32 %v1352_v38  ;;  %v4023_v17 = vpop.eup %4022 }
 0x254   : > { %4034 = vrcp.f32 %v1353_v8  ;;  %v1351_v53 = vadd.f32 1.0, %v4023_v17  ;;  %v5722_v8 = vld [vmem:[#allocation9_spill] sm:$0xff]  ;;  %v5723_v17 = vld [vmem:[#allocation10_spill] sm:$0xff] }
 0x256   : > { %4036 = vrcp.f32 %v1351_v53 }
 0x259   : > { %v4025_v15 = vpop.eup %4024 }
 0x25a   : > { %v4027_v20 = vpop.eup %4026  ;;  %v1371_v36 = vmul.f32 %v4025_v15, %v4021_v16 }
 0x25b   : > { %v4029_v26 = vpop.eup %4028 }
 0x25c   : > { %v4031_v7 = vpop.eup %4030  ;;  %v1369_v56 = vmul.f32 %v4029_v26, %v4988_v3 }
 0x25d   : > { %v4033_v63 = vpop.eup %4032  ;;  %v1354_v54 = vadd.f32 1.0, %v4031_v7  ;;  %v5724_v7 = vld [vmem:[#allocation11_spill] sm:$0xff] }
 0x25e   : > { %v5039_v24 = vadd.f32 %v1371_v36, %v1369_v56  ;;  %v1372_v39 = vmul.f32 %v4033_v63, %v4027_v20  ;;  %v4035_v25 = vpop.eup %4034  ;;  %v5725_v63 = vld [vmem:[#allocation12_spill] sm:$0xff] }
 0x25f   : > { %v1370_v44 = vmul.f32 %v4035_v25, %v4991_v30 }
 0x260   : > { %4038 = vtanh.f32 %v5039_v24  ;;  %v4037_v45 = vpop.eup %4036 }
 0x261   : > { %v5043_v62 = vadd.f32 %v1372_v39, %v1370_v44  ;;  %4040 = vrcp.f32 %v1354_v54  ;;  %v5726_v44 = vld [vmem:[#allocation13_spill] sm:$0xff] }
 0x263   : > { %4042 = vtanh.f32 %v5043_v62 }
 0x26a   : > { %v4039_v32 = vpop.eup %4038 }
 0x26b   : > { %v1377_v0 = vmul.f32 %v4039_v32, %v4037_v45  ;;  %v4041_v3 = vpop.eup %4040  ;;  %v5727_v32 = vld [vmem:[#allocation14_spill] sm:$0xff] }
 0x26d   : > { %1453 = vmatmul.mubr.f32.vlgmr.msra.gmra.mrb[40].mxu0 %v1377_v0  ;;  %1530 = vmatmul.mubr.f32.vlgmr.msra.gmra.mrb[40].mxu1 %v1377_v0  ;;  %v4043_v4 = vpop.eup %4042 }
 0x26e   : > { %1458 = vmatprep.mubr.f32.mxu0 %v5717_v6  ;;  %1535 = vmatprep.mubr.f32.mxu1 %v5717_v6  ;;  %v1378_v51 = vmul.f32 %v4043_v4, %v4041_v3 }
 0x26f   : > { %3558 = vmatpush1.bf16.msra.mxu0 %v4399_v19  ;;  %3590 = vmatpush1.bf16.msra.mxu1 %v4454_v37 }
 0x270   : > { %3560 = vmatprep.subr.bf16.mxu0 %v4412_v23  ;;  %3592 = vmatprep.subr.bf16.mxu1 %v4462_v40 }
 0x271   : > { %1459 = vmatmul.mubr.f32.gmra.mrb[42].mxu0 %v1378_v51  ;;  %1536 = vmatmul.mubr.f32.gmra.mrb[42].mxu1 %v1378_v51 }
 0x272   : > { %1671 = vmatprep.mubr.f32.mxu0 %v5717_v6  ;;  %1748 = vmatprep.mubr.f32.mxu1 %v5717_v6 }
 0x273   : > { %3562 = vmatpush1.bf16.msra.mxu0 %v4430_v29  ;;  %3594 = vmatpush1.bf16.msra.mxu1 %v4484_v47 }
 0x274   : > { %3564 = vmatprep.subr.bf16.mxu0 %v4443_v33  ;;  %3596 = vmatprep.subr.bf16.mxu1 %v4502_v52 }
 0x277   : > { %3566 = vmatpush1.bf16.msra.mxu0 %v4469_v42  ;;  %3598 = vmatpush1.bf16.msra.mxu1 %v4527_v60 }
 0x278   : > { %3568 = vmatprep.subr.bf16.mxu0 %v4482_v46  ;;  %3600 = vmatprep.subr.bf16.mxu1 %v4539_v1 }
 0x27b   : > { %3570 = vmatpush1.bf16.msra.mxu0 %v4512_v55  ;;  %3602 = vmatpush1.bf16.msra.mxu1 %v4567_v11 }
 0x27c   : > { %3572 = vmatprep.subr.bf16.mxu0 %v4525_v59  ;;  %3604 = vmatprep.subr.bf16.mxu1 %v4577_v14 }
 0x27f   : > { %3574 = vmatpush1.bf16.msra.mxu0 %v4552_v5  ;;  %3606 = vmatpush1.bf16.msra.mxu1 %v4597_v22 }
 0x280   : > { %3576 = vmatprep.subr.bf16.mxu0 %v4565_v9  ;;  %3608 = vmatprep.subr.bf16.mxu1 %v4622_v35 }
 0x283   : > { %3578 = vmatpush1.bf16.msra.mxu0 %v4595_v21  ;;  %3610 = vmatpush1.bf16.msra.mxu1 %v4637_v43 }
 0x284   : > { %3580 = vmatprep.subr.bf16.mxu0 %v4610_v28  ;;  %3612 = vmatprep.subr.bf16.mxu1 %v4649_v49 }
 0x287   : > { %3582 = vmatpush1.bf16.msra.mxu0 %v4635_v41  ;;  %3614 = vmatpush1.bf16.msra.mxu1 %v4674_v58 }
 0x288   : > { %3584 = vmatprep.subr.bf16.mxu0 %v4647_v48  ;;  %3616 = vmatprep.subr.bf16.mxu1 %v4678_v61 }
 0x28b   : > { %3586 = vmatpush1.bf16.msra.mxu0 %v4672_v57  ;;  %3618 = vmatpush1.bf16.msra.mxu1 %v4689_v2 }
 0x28c   : > { %3620 = vmatprep.subr.bf16.mxu0 %v4397_v18  ;;  %3652 = vmatprep.subr.bf16.mxu1 %v4425_v27 }
 0x340   : > { %v1454_v30 = vpop.f32.mrb[40].mxu0  ;;  %v1531_v50 = vpop.f32.mrb[40].mxu1 }
 0x341   : > { %v1542_v10 = vadd.f32 %v1454_v30, %v5720_v31  ;;  %v1544_v34 = vadd.f32 %v1531_v50, %v5721_v12  ;;  %v1456_v38 = vpop.f32.mrb[41].mxu0  ;;  %v1533_v13 = vpop.f32.mrb[41].mxu1 }
 0x342   : > { %v1543_v16 = vadd.f32 %v1456_v38, %v5722_v8  ;;  %v1545_v15 = vadd.f32 %v1533_v13, %v5723_v17 }
 0x343   : > { %v3271_v20 = vmul.f32 -1.442695, %v1542_v10  ;;  %v3273_v51 = vmul.f32 -1.442695, %v1544_v34 }
 0x344   : > { %v3272_v36 = vmul.f32 -1.442695, %v1543_v16  ;;  %v1460_v26 = vpop.f32.mrb[42].mxu0  ;;  %v1537_v53 = vpop.f32.mrb[42].mxu1 }
 0x345   : > { %4044 = vpow2.f32 %v3271_v20  ;;  %v1546_v56 = vadd.f32 %v1460_v26, %v5724_v7  ;;  %v1548_v39 = vadd.f32 %v1537_v53, %v5725_v63  ;;  %v1462_v25 = vpop.f32.mrb[43].mxu0  ;;  %v1539_v54 = vpop.f32.mrb[43].mxu1 }
 0x346   : > { %v1547_v45 = vadd.f32 %v1462_v25, %v5726_v44  ;;  %v1549_v0 = vadd.f32 %v1539_v54, %v5727_v32  ;;  %4046 = vpow2.f32 %v3272_v36 }
 0x347   : > { %v3274_v3 = vmul.f32 -1.442695, %v1546_v56  ;;  %v3276_v10 = vmul.f32 -1.442695, %v1548_v39 }
 0x348   : > { %v3275_v4 = vmul.f32 -1.442695, %v1547_v45 }
 0x349   : > { %4048 = vpow2.f32 %v3274_v3 }
 0x34a   : > { %4050 = vpow2.f32 %v3275_v4 }
 0x34b   : > { %4052 = vtanh.f32 %v1545_v15 }
 0x34c   : > { %4054 = vpow2.f32 %v3273_v51 }
 0x34f   : > { %v4045_v30 = vpop.eup %4044 }
 0x350   : > { %v1568_v50 = vadd.f32 1.0, %v4045_v30  ;;  %v4047_v31 = vpop.eup %4046 }
 0x351   : > { %v1569_v12 = vadd.f32 1.0, %v4047_v31  ;;  %v5728_v31 = vld [vmem:[#allocation15_spill] sm:$0xff] }
 0x352   : > { %4056 = vrcp.f32 %v1568_v50 }
 0x353   : > { %v4049_v38 = vpop.eup %4048  ;;  %4058 = vtanh.f32 %v1549_v0 }
 0x354   : > { %4060 = vrcp.f32 %v1569_v12  ;;  %v1571_v13 = vadd.f32 1.0, %v4049_v38  ;;  %v4051_v8 = vpop.eup %4050  ;;  %v5729_v12 = vld [vmem:[#allocation16_spill] sm:$0xff] }
 0x355   : > { %4062 = vpow2.f32 %v3276_v10  ;;  %v1572_v16 = vadd.f32 1.0, %v4051_v8  ;;  %v4053_v17 = vpop.eup %4052 }
 0x356   : > { %4064 = vrcp.f32 %v1571_v13  ;;  %v4055_v20 = vpop.eup %4054 }
 0x357   : > { %4066 = vrcp.f32 %v1572_v16  ;;  %v1570_v53 = vadd.f32 1.0, %v4055_v20  ;;  %v5730_v16 = vld [vmem:[#allocation17_spill] sm:$0xff]  ;;  %v5731_v20 = vld [vmem:[#allocation18_spill] sm:$0xff] }
 0x359   : > { %4068 = vrcp.f32 %v1570_v53 }
 0x35c   : > { %v4057_v34 = vpop.eup %4056 }
 0x35d   : > { %v4059_v36 = vpop.eup %4058  ;;  %v1590_v26 = vmul.f32 %v4057_v34, %v4053_v17 }
 0x35e   : > { %v4061_v15 = vpop.eup %4060 }
 0x35f   : > { %v4063_v7 = vpop.eup %4062  ;;  %v1588_v56 = vmul.f32 %v4061_v15, %v5039_v24 }
 0x360   : > { %v4065_v63 = vpop.eup %4064  ;;  %v1573_v44 = vadd.f32 1.0, %v4063_v7  ;;  %v5732_v7 = vld [vmem:[#allocation19_spill] sm:$0xff] }
 0x361   : > { %v5091_v39 = vadd.f32 %v1590_v26, %v1588_v56  ;;  %v1591_v25 = vmul.f32 %v4065_v63, %v4059_v36  ;;  %v4067_v54 = vpop.eup %4066  ;;  %v5733_v63 = vld [vmem:[#allocation20_spill] sm:$0xff] }
 0x362   : > { %v1589_v45 = vmul.f32 %v4067_v54, %v5043_v62 }
 0x363   : > { %4070 = vtanh.f32 %v5091_v39  ;;  %v4069_v0 = vpop.eup %4068 }
 0x364   : > { %v5095_v32 = vadd.f32 %v1591_v25, %v1589_v45  ;;  %4072 = vrcp.f32 %v1573_v44  ;;  %v5734_v45 = vld [vmem:[#allocation21_spill] sm:$0xff] }
 0x366   : > { %4074 = vtanh.f32 %v5095_v32 }
 0x36d   : > { %v4071_v3 = vpop.eup %4070 }
 0x36e   : > { %v1596_v4 = vmul.f32 %v4071_v3, %v4069_v0  ;;  %v4073_v24 = vpop.eup %4072  ;;  %v5735_v3 = vld [vmem:[#allocation22_spill] sm:$0xff] }
 0x370   : > { %1672 = vmatmul.mubr.f32.vlgmr.msra.gmra.mrb[44].mxu0 %v1596_v4  ;;  %1749 = vmatmul.mubr.f32.vlgmr.msra.gmra.mrb[44].mxu1 %v1596_v4  ;;  %v4075_v51 = vpop.eup %4074 }
 0x371   : > { %1677 = vmatprep.mubr.f32.mxu0 %v5717_v6  ;;  %1754 = vmatprep.mubr.f32.mxu1 %v5717_v6  ;;  %v1597_v30 = vmul.f32 %v4075_v51, %v4073_v24 }
 0x372   : > { %3622 = vmatpush1.bf16.msra.mxu0 %v4399_v19  ;;  %3654 = vmatpush1.bf16.msra.mxu1 %v4454_v37 }
 0x373   : > { %3624 = vmatprep.subr.bf16.mxu0 %v4412_v23  ;;  %3656 = vmatprep.subr.bf16.mxu1 %v4462_v40 }
 0x374   : > { %1678 = vmatmul.mubr.f32.gmra.mrb[46].mxu0 %v1597_v30  ;;  %1755 = vmatmul.mubr.f32.gmra.mrb[46].mxu1 %v1597_v30 }
 0x375   : > { %1890 = vmatprep.mubr.f32.mxu0 %v5717_v6  ;;  %1967 = vmatprep.mubr.f32.mxu1 %v5717_v6 }
 0x376   : > { %3626 = vmatpush1.bf16.msra.mxu0 %v4430_v29  ;;  %3658 = vmatpush1.bf16.msra.mxu1 %v4484_v47 }
 0x377   : > { %3628 = vmatprep.subr.bf16.mxu0 %v4443_v33  ;;  %3660 = vmatprep.subr.bf16.mxu1 %v4502_v52 }
 0x37a   : > { %3630 = vmatpush1.bf16.msra.mxu0 %v4469_v42  ;;  %3662 = vmatpush1.bf16.msra.mxu1 %v4527_v60 }
 0x37b   : > { %3632 = vmatprep.subr.bf16.mxu0 %v4482_v46  ;;  %3664 = vmatprep.subr.bf16.mxu1 %v4539_v1 }
 0x37e   : > { %3634 = vmatpush1.bf16.msra.mxu0 %v4512_v55  ;;  %3666 = vmatpush1.bf16.msra.mxu1 %v4567_v11 }
 0x37f   : > { %3636 = vmatprep.subr.bf16.mxu0 %v4525_v59  ;;  %3668 = vmatprep.subr.bf16.mxu1 %v4577_v14 }
 0x382   : > { %3638 = vmatpush1.bf16.msra.mxu0 %v4552_v5  ;;  %3670 = vmatpush1.bf16.msra.mxu1 %v4597_v22 }
 0x383   : > { %3640 = vmatprep.subr.bf16.mxu0 %v4565_v9  ;;  %3672 = vmatprep.subr.bf16.mxu1 %v4622_v35 }
 0x386   : > { %3642 = vmatpush1.bf16.msra.mxu0 %v4595_v21  ;;  %3674 = vmatpush1.bf16.msra.mxu1 %v4637_v43 }
 0x387   : > { %3644 = vmatprep.subr.bf16.mxu0 %v4610_v28  ;;  %3676 = vmatprep.subr.bf16.mxu1 %v4649_v49 }
 0x38a   : > { %3646 = vmatpush1.bf16.msra.mxu0 %v4635_v41  ;;  %3678 = vmatpush1.bf16.msra.mxu1 %v4674_v58 }
 0x38b   : > { %3648 = vmatprep.subr.bf16.mxu0 %v4647_v48  ;;  %3680 = vmatprep.subr.bf16.mxu1 %v4678_v61 }
 0x38e   : > { %3650 = vmatpush1.bf16.msra.mxu0 %v4672_v57  ;;  %3682 = vmatpush1.bf16.msra.mxu1 %v4689_v2 }
 0x38f   : > { %3684 = vmatprep.subr.bf16.mxu0 %v4397_v18  ;;  %3716 = vmatprep.subr.bf16.mxu1 %v4425_v27 }
 0x443   : > { %v1673_v62 = vpop.f32.mrb[44].mxu0  ;;  %v1750_v50 = vpop.f32.mrb[44].mxu1 }
 0x444   : > { %v1761_v10 = vadd.f32 %v1673_v62, %v5728_v31  ;;  %v1763_v38 = vadd.f32 %v1750_v50, %v5729_v12  ;;  %v1675_v13 = vpop.f32.mrb[45].mxu0  ;;  %v1752_v8 = vpop.f32.mrb[45].mxu1 }
 0x445   : > { %v1762_v17 = vadd.f32 %v1675_v13, %v5730_v16  ;;  %v1764_v34 = vadd.f32 %v1752_v8, %v5731_v20 }
 0x446   : > { %v3277_v36 = vmul.f32 -1.442695, %v1761_v10  ;;  %v3279_v30 = vmul.f32 -1.442695, %v1763_v38 }
 0x447   : > { %v3278_v26 = vmul.f32 -1.442695, %v1762_v17  ;;  %v1679_v15 = vpop.f32.mrb[46].mxu0  ;;  %v1756_v53 = vpop.f32.mrb[46].mxu1 }
 0x448   : > { %4076 = vpow2.f32 %v3277_v36  ;;  %v1765_v56 = vadd.f32 %v1679_v15, %v5732_v7  ;;  %v1767_v25 = vadd.f32 %v1756_v53, %v5733_v63  ;;  %v1681_v54 = vpop.f32.mrb[47].mxu0  ;;  %v1758_v44 = vpop.f32.mrb[47].mxu1 }
 0x449   : > { %v1766_v0 = vadd.f32 %v1681_v54, %v5734_v45  ;;  %v1768_v4 = vadd.f32 %v1758_v44, %v5735_v3  ;;  %4078 = vpow2.f32 %v3278_v26 }
 0x44a   : > { %v3280_v24 = vmul.f32 -1.442695, %v1765_v56  ;;  %v3282_v10 = vmul.f32 -1.442695, %v1767_v25 }
 0x44b   : > { %v3281_v51 = vmul.f32 -1.442695, %v1766_v0 }
 0x44c   : > { %4080 = vpow2.f32 %v3280_v24 }
 0x44d   : > { %4082 = vpow2.f32 %v3281_v51 }
 0x44e   : > { %4084 = vtanh.f32 %v1764_v34 }
 0x44f   : > { %4086 = vpow2.f32 %v3279_v30 }
 0x452   : > { %v4077_v62 = vpop.eup %4076 }
 0x453   : > { %v1787_v50 = vadd.f32 1.0, %v4077_v62  ;;  %v4079_v31 = vpop.eup %4078 }
 0x454   : > { %v1788_v12 = vadd.f32 1.0, %v4079_v31  ;;  %v5736_v31 = vld [vmem:[#allocation23_spill] sm:$0xff] }
 0x455   : > { %4088 = vrcp.f32 %v1787_v50 }
 0x456   : > { %v4081_v13 = vpop.eup %4080  ;;  %4090 = vtanh.f32 %v1768_v4 }
 0x457   : > { %4092 = vrcp.f32 %v1788_v12  ;;  %v1790_v8 = vadd.f32 1.0, %v4081_v13  ;;  %v4083_v16 = vpop.eup %4082  ;;  %v5737_v12 = vld [vmem:[#allocation24_spill] sm:$0xff] }
 0x458   : > { %4094 = vpow2.f32 %v3282_v10  ;;  %v1791_v17 = vadd.f32 1.0, %v4083_v16  ;;  %v4085_v20 = vpop.eup %4084 }
 0x459   : > { %4096 = vrcp.f32 %v1790_v8  ;;  %v4087_v36 = vpop.eup %4086 }
 0x45a   : > { %4098 = vrcp.f32 %v1791_v17  ;;  %v1789_v53 = vadd.f32 1.0, %v4087_v36  ;;  %v5738_v17 = vld [vmem:[#allocation25_spill] sm:$0xff]  ;;  %v5739_v36 = vld [vmem:[#allocation26_spill] sm:$0xff] }
 0x45c   : > { %4100 = vrcp.f32 %v1789_v53 }
 0x45f   : > { %v4089_v38 = vpop.eup %4088 }
 0x460   : > { %v4091_v26 = vpop.eup %4090  ;;  %v1809_v15 = vmul.f32 %v4089_v38, %v4085_v20 }
 0x461   : > { %v4093_v34 = vpop.eup %4092 }
 0x462   : > { %v4095_v7 = vpop.eup %4094  ;;  %v1807_v56 = vmul.f32 %v4093_v34, %v5091_v39 }
 0x463   : > { %v4097_v63 = vpop.eup %4096  ;;  %v1792_v45 = vadd.f32 1.0, %v4095_v7  ;;  %v5740_v7 = vld [vmem:[#allocation27_spill] sm:$0xff] }
 0x464   : > { %v5143_v25 = vadd.f32 %v1809_v15, %v1807_v56  ;;  %v1810_v54 = vmul.f32 %v4097_v63, %v4091_v26  ;;  %v4099_v44 = vpop.eup %4098  ;;  %v5741_v63 = vld [vmem:[#allocation28_spill] sm:$0xff] }
 0x465   : > { %v1808_v0 = vmul.f32 %v4099_v44, %v5095_v32 }
 0x466   : > { %4102 = vtanh.f32 %v5143_v25  ;;  %v4101_v4 = vpop.eup %4100 }
 0x467   : > { %v5147_v3 = vadd.f32 %v1810_v54, %v1808_v0  ;;  %4104 = vrcp.f32 %v1792_v45  ;;  %v5742_v0 = vld [vmem:[#allocation29_spill] sm:$0xff] }
 0x469   : > { %4106 = vtanh.f32 %v5147_v3 }
 0x470   : > { %v4103_v24 = vpop.eup %4102 }
 0x471   : > { %v1815_v51 = vmul.f32 %v4103_v24, %v4101_v4  ;;  %v4105_v39 = vpop.eup %4104  ;;  %v5743_v24 = vld [vmem:[#allocation30_spill] sm:$0xff] }
 0x473   : > { %1891 = vmatmul.mubr.f32.vlgmr.msra.gmra.mrb[48].mxu0 %v1815_v51  ;;  %1968 = vmatmul.mubr.f32.vlgmr.msra.gmra.mrb[48].mxu1 %v1815_v51  ;;  %v4107_v30 = vpop.eup %4106 }
 0x474   : > { %1896 = vmatprep.mubr.f32.mxu0 %v5717_v6  ;;  %1973 = vmatprep.mubr.f32.mxu1 %v5717_v6  ;;  %v1816_v62 = vmul.f32 %v4107_v30, %v4105_v39 }
 0x475   : > { %3686 = vmatpush1.bf16.msra.mxu0 %v4399_v19  ;;  %3718 = vmatpush1.bf16.msra.mxu1 %v4454_v37 }
 0x476   : > { %3688 = vmatprep.subr.bf16.mxu0 %v4412_v23  ;;  %3720 = vmatprep.subr.bf16.mxu1 %v4462_v40 }
 0x477   : > { %1897 = vmatmul.mubr.f32.gmra.mrb[50].mxu0 %v1816_v62  ;;  %1974 = vmatmul.mubr.f32.gmra.mrb[50].mxu1 %v1816_v62 }
 0x478   : > { %2109 = vmatprep.mubr.f32.mxu0 %v5717_v6  ;;  %2186 = vmatprep.mubr.f32.mxu1 %v5717_v6 }
 0x479   : > { %3690 = vmatpush1.bf16.msra.mxu0 %v4430_v29  ;;  %3722 = vmatpush1.bf16.msra.mxu1 %v4484_v47 }
 0x47a   : > { %3692 = vmatprep.subr.bf16.mxu0 %v4443_v33  ;;  %3724 = vmatprep.subr.bf16.mxu1 %v4502_v52 }
 0x47d   : > { %3694 = vmatpush1.bf16.msra.mxu0 %v4469_v42  ;;  %3726 = vmatpush1.bf16.msra.mxu1 %v4527_v60 }
 0x47e   : > { %3696 = vmatprep.subr.bf16.mxu0 %v4482_v46  ;;  %3728 = vmatprep.subr.bf16.mxu1 %v4539_v1 }
 0x481   : > { %3698 = vmatpush1.bf16.msra.mxu0 %v4512_v55  ;;  %3730 = vmatpush1.bf16.msra.mxu1 %v4567_v11 }
 0x482   : > { %3700 = vmatprep.subr.bf16.mxu0 %v4525_v59  ;;  %3732 = vmatprep.subr.bf16.mxu1 %v4577_v14 }
 0x485   : > { %3702 = vmatpush1.bf16.msra.mxu0 %v4552_v5  ;;  %3734 = vmatpush1.bf16.msra.mxu1 %v4597_v22 }
 0x486   : > { %3704 = vmatprep.subr.bf16.mxu0 %v4565_v9  ;;  %3736 = vmatprep.subr.bf16.mxu1 %v4622_v35 }
 0x489   : > { %3706 = vmatpush1.bf16.msra.mxu0 %v4595_v21  ;;  %3738 = vmatpush1.bf16.msra.mxu1 %v4637_v43 }
 0x48a   : > { %3708 = vmatprep.subr.bf16.mxu0 %v4610_v28  ;;  %3740 = vmatprep.subr.bf16.mxu1 %v4649_v49 }
 0x48d   : > { %3710 = vmatpush1.bf16.msra.mxu0 %v4635_v41  ;;  %3742 = vmatpush1.bf16.msra.mxu1 %v4674_v58 }
 0x48e   : > { %3712 = vmatprep.subr.bf16.mxu0 %v4647_v48  ;;  %3744 = vmatprep.subr.bf16.mxu1 %v4678_v61 }
 0x491   : > { %3714 = vmatpush1.bf16.msra.mxu0 %v4672_v57  ;;  %3746 = vmatpush1.bf16.msra.mxu1 %v4689_v2 }
 0x492   : > { %3748 = vmatprep.subr.bf16.mxu0 %v4397_v18  ;;  %3780 = vmatprep.subr.bf16.mxu1 %v4425_v27 }
 0x546   : > { %v1892_v32 = vpop.f32.mrb[48].mxu0  ;;  %v1969_v50 = vpop.f32.mrb[48].mxu1 }
 0x547   : > { %v1980_v10 = vadd.f32 %v1892_v32, %v5736_v31  ;;  %v1982_v13 = vadd.f32 %v1969_v50, %v5737_v12  ;;  %v1894_v8 = vpop.f32.mrb[49].mxu0  ;;  %v1971_v16 = vpop.f32.mrb[49].mxu1 }
 0x548   : > { %v1981_v20 = vadd.f32 %v1894_v8, %v5738_v17  ;;  %v1983_v38 = vadd.f32 %v1971_v16, %v5739_v36 }
 0x549   : > { %v3283_v26 = vmul.f32 -1.442695, %v1980_v10  ;;  %v3285_v62 = vmul.f32 -1.442695, %v1982_v13 }
 0x54a   : > { %v3284_v15 = vmul.f32 -1.442695, %v1981_v20  ;;  %v1898_v34 = vpop.f32.mrb[50].mxu0  ;;  %v1975_v53 = vpop.f32.mrb[50].mxu1 }
 0x54b   : > { %4108 = vpow2.f32 %v3283_v26  ;;  %v1984_v56 = vadd.f32 %v1898_v34, %v5740_v7  ;;  %v1986_v54 = vadd.f32 %v1975_v53, %v5741_v63  ;;  %v1900_v44 = vpop.f32.mrb[51].mxu0  ;;  %v1977_v45 = vpop.f32.mrb[51].mxu1 }
 0x54c   : > { %v1985_v4 = vadd.f32 %v1900_v44, %v5742_v0  ;;  %v1987_v51 = vadd.f32 %v1977_v45, %v5743_v24  ;;  %4110 = vpow2.f32 %v3284_v15 }
 0x54d   : > { %v3286_v39 = vmul.f32 -1.442695, %v1984_v56  ;;  %v3288_v10 = vmul.f32 -1.442695, %v1986_v54 }
 0x54e   : > { %v3287_v30 = vmul.f32 -1.442695, %v1985_v4 }
 0x54f   : > { %4112 = vpow2.f32 %v3286_v39 }
 0x550   : > { %4114 = vpow2.f32 %v3287_v30 }
 0x551   : > { %4116 = vtanh.f32 %v1983_v38 }
 0x552   : > { %4118 = vpow2.f32 %v3285_v62 }
 0x555   : > { %v4109_v32 = vpop.eup %4108 }
 0x556   : > { %v2006_v50 = vadd.f32 1.0, %v4109_v32  ;;  %v4111_v31 = vpop.eup %4110 }
 0x557   : > { %v2007_v12 = vadd.f32 1.0, %v4111_v31  ;;  %v5744_v31 = vld [vmem:[#allocation31_spill] sm:$0xff] }
 0x558   : > { %4120 = vrcp.f32 %v2006_v50 }
 0x559   : > { %v4113_v8 = vpop.eup %4112  ;;  %4122 = vtanh.f32 %v1987_v51 }
 0x55a   : > { %4124 = vrcp.f32 %v2007_v12  ;;  %v2009_v16 = vadd.f32 1.0, %v4113_v8  ;;  %v4115_v17 = vpop.eup %4114  ;;  %v5745_v12 = vld [vmem:[#allocation32_spill] sm:$0xff] }
 0x55b   : > { %4126 = vpow2.f32 %v3288_v10  ;;  %v2010_v20 = vadd.f32 1.0, %v4115_v17  ;;  %v4117_v36 = vpop.eup %4116 }
 0x55c   : > { %4128 = vrcp.f32 %v2009_v16  ;;  %v4119_v26 = vpop.eup %4118 }
 0x55d   : > { %4130 = vrcp.f32 %v2010_v20  ;;  %v2008_v53 = vadd.f32 1.0, %v4119_v26  ;;  %v5746_v20 = vld [vmem:[#allocation33_spill] sm:$0xff]  ;;  %v5747_v26 = vld [vmem:[#allocation34_spill] sm:$0xff] }
 0x55f   : > { %4132 = vrcp.f32 %v2008_v53 }
 0x562   : > { %v4121_v13 = vpop.eup %4120 }
 0x563   : > { %v4123_v15 = vpop.eup %4122  ;;  %v2028_v34 = vmul.f32 %v4121_v13, %v4117_v36 }
 0x564   : > { %v4125_v38 = vpop.eup %4124 }
 0x565   : > { %v4127_v7 = vpop.eup %4126  ;;  %v2026_v56 = vmul.f32 %v4125_v38, %v5143_v25 }
 0x566   : > { %v4129_v63 = vpop.eup %4128  ;;  %v2011_v0 = vadd.f32 1.0, %v4127_v7 }
 0x567   : > { %v5195_v54 = vadd.f32 %v2028_v34, %v2026_v56  ;;  %v2029_v44 = vmul.f32 %v4129_v63, %v4123_v15  ;;  %v4131_v45 = vpop.eup %4130 }
 0x568   : > { %v2027_v4 = vmul.f32 %v4131_v45, %v5147_v3  ;;  %v5750_v45 = vld [vmem:[#allocation37_spill] sm:$0xff] }
 0x569   : > { %4134 = vtanh.f32 %v5195_v54  ;;  %v4133_v51 = vpop.eup %4132 }
 0x56a   : > { %v5199_v24 = vadd.f32 %v2029_v44, %v2027_v4  ;;  %4136 = vrcp.f32 %v2011_v0  ;;  %v5751_v4 = vld [vmem:[#allocation38_spill] sm:$0xff] }
 0x56c   : > { %4138 = vtanh.f32 %v5199_v24 }
 0x573   : > { %v4135_v39 = vpop.eup %4134 }
 0x574   : > { %v2034_v30 = vmul.f32 %v4135_v39, %v4133_v51  ;;  %v4137_v25 = vpop.eup %4136 }
 0x576   : > { %2110 = vmatmul.mubr.f32.vlgmr.msra.gmra.mrb[52].mxu0 %v2034_v30  ;;  %2187 = vmatmul.mubr.f32.vlgmr.msra.gmra.mrb[52].mxu1 %v2034_v30  ;;  %v4139_v62 = vpop.eup %4138 }
 0x577   : > { %2115 = vmatprep.mubr.f32.mxu0 %v5717_v6  ;;  %2192 = vmatprep.mubr.f32.mxu1 %v5717_v6  ;;  %v2035_v32 = vmul.f32 %v4139_v62, %v4137_v25 }
 0x578   : > { %3750 = vmatpush1.bf16.msra.mxu0 %v4399_v19  ;;  %3782 = vmatpush1.bf16.msra.mxu1 %v4454_v37 }
 0x579   : > { %3752 = vmatprep.subr.bf16.mxu0 %v4412_v23  ;;  %3784 = vmatprep.subr.bf16.mxu1 %v4462_v40 }
 0x57a   : > { %2116 = vmatmul.mubr.f32.gmra.mrb[54].mxu0 %v2035_v32  ;;  %2193 = vmatmul.mubr.f32.gmra.mrb[54].mxu1 %v2035_v32 }
 0x57b   : > { %2328 = vmatprep.mubr.f32.mxu0 %v5717_v6  ;;  %2405 = vmatprep.mubr.f32.mxu1 %v5717_v6 }
 0x57c   : > { %3754 = vmatpush1.bf16.msra.mxu0 %v4430_v29  ;;  %3786 = vmatpush1.bf16.msra.mxu1 %v4484_v47 }
 0x57d   : > { %3756 = vmatprep.subr.bf16.mxu0 %v4443_v33  ;;  %3788 = vmatprep.subr.bf16.mxu1 %v4502_v52 }
 0x580   : > { %3758 = vmatpush1.bf16.msra.mxu0 %v4469_v42  ;;  %3790 = vmatpush1.bf16.msra.mxu1 %v4527_v60 }
 0x581   : > { %3760 = vmatprep.subr.bf16.mxu0 %v4482_v46  ;;  %3792 = vmatprep.subr.bf16.mxu1 %v4539_v1 }
 0x584   : > { %3762 = vmatpush1.bf16.msra.mxu0 %v4512_v55  ;;  %3794 = vmatpush1.bf16.msra.mxu1 %v4567_v11 }
 0x585   : > { %3764 = vmatprep.subr.bf16.mxu0 %v4525_v59  ;;  %3796 = vmatprep.subr.bf16.mxu1 %v4577_v14 }
 0x588   : > { %3766 = vmatpush1.bf16.msra.mxu0 %v4552_v5  ;;  %3798 = vmatpush1.bf16.msra.mxu1 %v4597_v22 }
 0x589   : > { %3768 = vmatprep.subr.bf16.mxu0 %v4565_v9  ;;  %3800 = vmatprep.subr.bf16.mxu1 %v4622_v35 }
 0x58c   : > { %3770 = vmatpush1.bf16.msra.mxu0 %v4595_v21  ;;  %3802 = vmatpush1.bf16.msra.mxu1 %v4637_v43 }
 0x58d   : > { %3772 = vmatprep.subr.bf16.mxu0 %v4610_v28  ;;  %3804 = vmatprep.subr.bf16.mxu1 %v4649_v49 }
 0x590   : > { %3774 = vmatpush1.bf16.msra.mxu0 %v4635_v41  ;;  %3806 = vmatpush1.bf16.msra.mxu1 %v4674_v58 }
 0x591   : > { %3776 = vmatprep.subr.bf16.mxu0 %v4647_v48  ;;  %3808 = vmatprep.subr.bf16.mxu1 %v4678_v61 }
 0x594   : > { %3778 = vmatpush1.bf16.msra.mxu0 %v4672_v57  ;;  %3810 = vmatpush1.bf16.msra.mxu1 %v4689_v2 }
 0x595   : > { %3812 = vmatprep.subr.bf16.mxu0 %v4397_v18  ;;  %3844 = vmatprep.subr.bf16.mxu1 %v4425_v27  ;;  %v5748_v18 = vld [vmem:[#allocation35_spill] sm:$0xff]  ;;  %v5749_v27 = vld [vmem:[#allocation36_spill] sm:$0xff] }
 0x649   : > { %v2111_v3 = vpop.f32.mrb[52].mxu0  ;;  %v2188_v50 = vpop.f32.mrb[52].mxu1 }
 0x64a   : > { %v2199_v10 = vadd.f32 %v2111_v3, %v5744_v31  ;;  %v2201_v8 = vadd.f32 %v2188_v50, %v5745_v12  ;;  %v2113_v16 = vpop.f32.mrb[53].mxu0  ;;  %v2190_v17 = vpop.f32.mrb[53].mxu1 }
 0x64b   : > { %v2200_v36 = vadd.f32 %v2113_v16, %v5746_v20  ;;  %v2202_v13 = vadd.f32 %v2190_v17, %v5747_v26 }
 0x64c   : > { %v3289_v15 = vmul.f32 -1.442695, %v2199_v10  ;;  %v3291_v25 = vmul.f32 -1.442695, %v2201_v8 }
 0x64d   : > { %v3290_v34 = vmul.f32 -1.442695, %v2200_v36  ;;  %v2117_v38 = vpop.f32.mrb[54].mxu0  ;;  %v2194_v53 = vpop.f32.mrb[54].mxu1 }
 0x64e   : > { %4140 = vpow2.f32 %v3289_v15  ;;  %v2203_v7 = vadd.f32 %v2117_v38, %v5748_v18  ;;  %v2205_v56 = vadd.f32 %v2194_v53, %v5749_v27  ;;  %v2119_v63 = vpop.f32.mrb[55].mxu0  ;;  %v2196_v44 = vpop.f32.mrb[55].mxu1 }
 0x64f   : > { %v2204_v0 = vadd.f32 %v2119_v63, %v5750_v45  ;;  %v2206_v51 = vadd.f32 %v2196_v44, %v5751_v4  ;;  %4142 = vpow2.f32 %v3290_v34 }
 0x650   : > { %v3292_v39 = vmul.f32 -1.442695, %v2203_v7  ;;  %v3294_v50 = vmul.f32 -1.442695, %v2205_v56 }
 0x651   : > { %v3293_v30 = vmul.f32 -1.442695, %v2204_v0 }
 0x652   : > { %4144 = vpow2.f32 %v3292_v39 }
 0x653   : > { %4146 = vpow2.f32 %v3293_v30 }
 0x654   : > { %4148 = vtanh.f32 %v2202_v13 }
 0x655   : > { %4150 = vpow2.f32 %v3291_v25 }
 0x658   : > { %v4141_v62 = vpop.eup %4140 }
 0x659   : > { %v2225_v32 = vadd.f32 1.0, %v4141_v62  ;;  %v4143_v3 = vpop.eup %4142 }
 0x65a   : > { %v2226_v31 = vadd.f32 1.0, %v4143_v3 }
 0x65b   : > { %4152 = vrcp.f32 %v2225_v32 }
 0x65c   : > { %v4145_v10 = vpop.eup %4144  ;;  %4154 = vtanh.f32 %v2206_v51 }
 0x65d   : > { %4156 = vrcp.f32 %v2226_v31  ;;  %v2228_v12 = vadd.f32 1.0, %v4145_v10  ;;  %v4147_v16 = vpop.eup %4146 }
 0x65e   : > { %4158 = vpow2.f32 %v3294_v50  ;;  %v2229_v17 = vadd.f32 1.0, %v4147_v16  ;;  %v4149_v20 = vpop.eup %4148 }
 0x65f   : > { %4160 = vrcp.f32 %v2228_v12  ;;  %v4151_v36 = vpop.eup %4150 }
 0x660   : > { %4162 = vrcp.f32 %v2229_v17  ;;  %v2227_v34 = vadd.f32 1.0, %v4151_v36 }
 0x662   : > { %4164 = vrcp.f32 %v2227_v34 }
 0x665   : > { %v4153_v8 = vpop.eup %4152 }
 0x666   : > { %v4155_v26 = vpop.eup %4154  ;;  %v2247_v15 = vmul.f32 %v4153_v8, %v4149_v20 }
 0x667   : > { %v4157_v13 = vpop.eup %4156 }
 0x668   : > { %v4159_v38 = vpop.eup %4158  ;;  %v2245_v53 = vmul.f32 %v4157_v13, %v5195_v54 }
 0x669   : > { %v4161_v18 = vpop.eup %4160  ;;  %v2230_v63 = vadd.f32 1.0, %v4159_v38 }
 0x66a   : > { %v5247_v7 = vadd.f32 %v2247_v15, %v2245_v53  ;;  %v2248_v27 = vmul.f32 %v4161_v18, %v4155_v26  ;;  %v4163_v56 = vpop.eup %4162 }
 0x66b   : > { %v2246_v44 = vmul.f32 %v4163_v56, %v5199_v24 }
 0x66c   : > { %4166 = vtanh.f32 %v5247_v7  ;;  %v4165_v0 = vpop.eup %4164 }
 0x66d   : > { %v5251_v45 = vadd.f32 %v2248_v27, %v2246_v44  ;;  %4168 = vrcp.f32 %v2230_v63 }
 0x66f   : > { %4170 = vtanh.f32 %v5251_v45 }
 0x676   : > { %v4167_v4 = vpop.eup %4166 }
 0x677   : > { %v2253_v51 = vmul.f32 %v4167_v4, %v4165_v0  ;;  %v4169_v54 = vpop.eup %4168 }
 0x679   : > { %2329 = vmatmul.mubr.f32.vlgmr.msra.gmra.mrb[56].mxu0 %v2253_v51  ;;  %2406 = vmatmul.mubr.f32.vlgmr.msra.gmra.mrb[56].mxu1 %v2253_v51  ;;  %v4171_v39 = vpop.eup %4170 }
 0x67a   : > { %2334 = vmatprep.mubr.f32.mxu0 %v5717_v6  ;;  %2411 = vmatprep.mubr.f32.mxu1 %v5717_v6  ;;  %v2254_v30 = vmul.f32 %v4171_v39, %v4169_v54  ;;  %v2697_v39 = vld [vmem:[%s5656_s6 + $0x20] sm:$0xff] }
 0x67b   : > { %3814 = vmatpush1.bf16.msra.mxu0 %v4399_v19  ;;  %3846 = vmatpush1.bf16.msra.mxu1 %v4454_v37  ;;  %v5753_v37 = vld [vmem:[#allocation40_spill] sm:$0xff] }
 0x67c   : > { %3816 = vmatprep.subr.bf16.mxu0 %v4412_v23  ;;  %3848 = vmatprep.subr.bf16.mxu1 %v4462_v40 }
 0x67d   : > { %2335 = vmatmul.mubr.f32.gmra.mrb[58].mxu0 %v2254_v30  ;;  %2412 = vmatmul.mubr.f32.gmra.mrb[58].mxu1 %v2254_v30 }
 0x67e   : > { %2547 = vmatprep.mubr.f32.mxu0 %v5717_v6  ;;  %2624 = vmatprep.mubr.f32.mxu1 %v5717_v6 }
 0x67f   : > { %3818 = vmatpush1.bf16.msra.mxu0 %v4430_v29  ;;  %3850 = vmatpush1.bf16.msra.mxu1 %v4484_v47  ;;  %v5752_v29 = vld [vmem:[#allocation39_spill] sm:$0xff]  ;;  %v5754_v47 = vld [vmem:[#allocation41_spill] sm:$0xff] }
 0x680   : > { %3820 = vmatprep.subr.bf16.mxu0 %v4443_v33  ;;  %3852 = vmatprep.subr.bf16.mxu1 %v4502_v52 }
 0x683   : > { %3822 = vmatpush1.bf16.msra.mxu0 %v4469_v42  ;;  %3854 = vmatpush1.bf16.msra.mxu1 %v4527_v60 }
 0x684   : > { %3824 = vmatprep.subr.bf16.mxu0 %v4482_v46  ;;  %3856 = vmatprep.subr.bf16.mxu1 %v4539_v1 }
 0x687   : > { %3826 = vmatpush1.bf16.msra.mxu0 %v4512_v55  ;;  %3858 = vmatpush1.bf16.msra.mxu1 %v4567_v11  ;;  %v5755_v55 = vld [vmem:[#allocation42_spill] sm:$0xff]  ;;  %v5756_v11 = vld [vmem:[#allocation43_spill] sm:$0xff] }
 0x688   : > { %3828 = vmatprep.subr.bf16.mxu0 %v4525_v59  ;;  %3860 = vmatprep.subr.bf16.mxu1 %v4577_v14 }
 0x68b   : > { %3830 = vmatpush1.bf16.msra.mxu0 %v4552_v5  ;;  %3862 = vmatpush1.bf16.msra.mxu1 %v4597_v22 }
 0x68c   : > { %3832 = vmatprep.subr.bf16.mxu0 %v4565_v9  ;;  %3864 = vmatprep.subr.bf16.mxu1 %v4622_v35 }
 0x68f   : > { %3834 = vmatpush1.bf16.msra.mxu0 %v4595_v21  ;;  %3866 = vmatpush1.bf16.msra.mxu1 %v4637_v43  ;;  %v5757_v21 = vld [vmem:[#allocation44_spill] sm:$0xff] }
 0x690   : > { %3836 = vmatprep.subr.bf16.mxu0 %v4610_v28  ;;  %3868 = vmatprep.subr.bf16.mxu1 %v4649_v49 }
 0x693   : > { %3838 = vmatpush1.bf16.msra.mxu0 %v4635_v41  ;;  %3870 = vmatpush1.bf16.msra.mxu1 %v4674_v58  ;;  %v5758_v41 = vld [vmem:[#allocation45_spill] sm:$0xff] }
 0x694   : > { %3840 = vmatprep.subr.bf16.mxu0 %v4647_v48  ;;  %3872 = vmatprep.subr.bf16.mxu1 %v4678_v61  ;;  %v5759_v48 = vld [vmem:[#allocation46_spill] sm:$0xff] }
 0x697   : > { %3842 = vmatpush1.bf16.msra.mxu0 %v4672_v57  ;;  %3874 = vmatpush1.bf16.msra.mxu1 %v4689_v2 }
 0x74c   : > { %v2330_v19 = vpop.f32.mrb[56].mxu0  ;;  %v2407_v23 = vpop.f32.mrb[56].mxu1 }
 0x74d   : > { %v2418_v33 = vadd.f32 %v2330_v19, %v5752_v29  ;;  %v2420_v40 = vadd.f32 %v2407_v23, %v5753_v37  ;;  %v2332_v42 = vpop.f32.mrb[57].mxu0  ;;  %v2409_v46 = vpop.f32.mrb[57].mxu1  ;;  %v2693_v19 = vld [vmem:[%s5656_s6] sm:$0xff]  ;;  %v2696_v23 = vld [vmem:[%s5656_s6 + $0x18] sm:$0xff]  ;;  %v2703_v37 = vld [vmem:[%s5656_s6 + $0x50] sm:$0xff] }
 0x74e   : > { %v2419_v52 = vadd.f32 %v2332_v42, %v5754_v47  ;;  %v2421_v59 = vadd.f32 %v2409_v46, %v5755_v55  ;;  %v3877_v29 = vpack.c.bf16 %v2696_v23, %v2693_v19  ;;  %v2698_v46 = vld [vmem:[%s5656_s6 + $0x28] sm:$0xff]  ;;  %v2699_v47 = vld [vmem:[%s5656_s6 + $0x30] sm:$0xff] }
 0x74f   : > { %v3295_v60 = vmul.f32 -1.442695, %v2418_v33  ;;  %v3297_v61 = vmul.f32 -1.442695, %v2420_v40  ;;  %v2700_v33 = vld [vmem:[%s5656_s6 + $0x38] sm:$0xff]  ;;  %v2695_v40 = vld [vmem:[%s5656_s6 + $0x10] sm:$0xff] }
 0x750   : > { %v3296_v1 = vmul.f32 -1.442695, %v2419_v52  ;;  %v2336_v5 = vpop.f32.mrb[58].mxu0  ;;  %v2413_v9 = vpop.f32.mrb[58].mxu1  ;;  %v3879_v42 = vpack.c.bf16 %v2703_v37, %v2700_v33  ;;  %v2702_v52 = vld [vmem:[%s5656_s6 + $0x48] sm:$0xff]  ;;  %v3907_v55 = vpack.c.bf16 %v2698_v46, %v2695_v40  ;;  %v2735_v23 = vld [vmem:[%s5656_s6 + $0x150] sm:$0xff] }
 0x751   : > { %4172 = vpow2.f32 %v3295_v60  ;;  %v2422_v14 = vadd.f32 %v2336_v5, %v5756_v11  ;;  %v2424_v22 = vadd.f32 %v2413_v9, %v5757_v21  ;;  %v2338_v28 = vpop.f32.mrb[59].mxu0  ;;  %v2415_v35 = vpop.f32.mrb[59].mxu1  ;;  %v2706_v60 = vld [vmem:[%s5656_s6 + $0x68] sm:$0xff]  ;;  %v2701_v5 = vld [vmem:[%s5656_s6 + $0x40] sm:$0xff]  ;;  %v2704_v11 = vld [vmem:[%s5656_s6 + $0x58] sm:$0xff] }
 0x752   : > { %v2423_v43 = vadd.f32 %v2338_v28, %v5758_v41  ;;  %v2425_v49 = vadd.f32 %v2415_v35, %v5759_v48  ;;  %4174 = vpow2.f32 %v3296_v1  ;;  %3908 = vmatprep.subr.bf16.mxu1 %v3907_v55  ;;  %v2709_v1 = vld [vmem:[%s5656_s6 + $0x80] sm:$0xff]  ;;  %v2708_v21 = vld [vmem:[%s5656_s6 + $0x78] sm:$0xff]  ;;  %v2715_v41 = vld [vmem:[%s5656_s6 + $0xb0] sm:$0xff] }
 0x753   : > { %v3298_v57 = vmul.f32 -1.442695, %v2422_v14  ;;  %v3300_v62 = vmul.f32 -1.442695, %v2424_v22  ;;  %v3883_v9 = vpack.c.bf16 %v2709_v1, %v2706_v60  ;;  %v2705_v14 = vld [vmem:[%s5656_s6 + $0x60] sm:$0xff]  ;;  %v3911_v22 = vpack.c.bf16 %v2704_v11, %v2701_v5  ;;  %v2712_v35 = vld [vmem:[%s5656_s6 + $0x98] sm:$0xff] }
 0x754   : > { %v3299_v58 = vmul.f32 -1.442695, %v2423_v43  ;;  %v3885_v28 = vpack.c.bf16 %v2708_v21, %v2705_v14  ;;  %v2707_v43 = vld [vmem:[%s5656_s6 + $0x70] sm:$0xff]  ;;  %v3887_v48 = vpack.c.bf16 %v2715_v41, %v2712_v35  ;;  %v2734_v19 = vld [vmem:[%s5656_s6 + $0x148] sm:$0xff]  ;;  %v2737_v40 = vld [vmem:[%s5656_s6 + $0x160] sm:$0xff] }
 0x755   : > { %4176 = vpow2.f32 %v3298_v57  ;;  %v2711_v57 = vld [vmem:[%s5656_s6 + $0x90] sm:$0xff]  ;;  %v5761_v60 = vld [vmem:[#allocation48_spill] sm:$0xff]  ;;  %v5762_v11 = vld [vmem:[#allocation49_spill] sm:$0xff] }
 0x756   : > { %4178 = vpow2.f32 %v3299_v58  ;;  %v2714_v58 = vld [vmem:[%s5656_s6 + $0xa8] sm:$0xff]  ;;  %v5763_v21 = vld [vmem:[#allocation50_spill] sm:$0xff] }
 0x757   : > { %4180 = vtanh.f32 %v2421_v59  ;;  %v3881_v59 = vpack.c.bf16 %v2702_v52, %v2699_v47 }
 0x758   : > { %4182 = vpow2.f32 %v3297_v61 }
 0x75b   : > { %v4173_v2 = vpop.eup %4172 }
 0x75c   : > { %v2444_v24 = vadd.f32 1.0, %v4173_v2  ;;  %v4175_v25 = vpop.eup %4174  ;;  %v3889_v2 = vpack.c.bf16 %v2714_v58, %v2711_v57  ;;  %v5765_v57 = vld [vmem:[#allocation52_spill] sm:$0xff] }
 0x75d   : > { %v2445_v32 = vadd.f32 1.0, %v4175_v25  ;;  %v2721_v25 = vld [vmem:[%s5656_s6 + $0xe0] sm:$0xff] }
 0x75e   : > { %4184 = vrcp.f32 %v2444_v24  ;;  %v2718_v24 = vld [vmem:[%s5656_s6 + $0xc8] sm:$0xff] }
 0x75f   : > { %v4177_v3 = vpop.eup %4176  ;;  %4186 = vtanh.f32 %v2425_v49  ;;  %v2710_v49 = vld [vmem:[%s5656_s6 + $0x88] sm:$0xff] }
 0x760   : > { %4188 = vrcp.f32 %v2445_v32  ;;  %v2447_v50 = vadd.f32 1.0, %v4177_v3  ;;  %v4179_v31 = vpop.eup %4178  ;;  %v3915_v61 = vpack.c.bf16 %v2710_v49, %v2707_v43  ;;  %v3891_v32 = vpack.c.bf16 %v2721_v25, %v2718_v24  ;;  %v2716_v3 = vld [vmem:[%s5656_s6 + $0xb8] sm:$0xff]  ;;  %v5766_v24 = vld [vmem:[#allocation53_spill] sm:$0xff] }
 0x761   : > { %4190 = vpow2.f32 %v3300_v62  ;;  %v2448_v10 = vadd.f32 1.0, %v4179_v31  ;;  %v4181_v12 = vpop.eup %4180  ;;  %v2713_v62 = vld [vmem:[%s5656_s6 + $0xa0] sm:$0xff]  ;;  %v2720_v31 = vld [vmem:[%s5656_s6 + $0xd8] sm:$0xff] }
 0x762   : > { %4192 = vrcp.f32 %v2447_v50  ;;  %v4183_v16 = vpop.eup %4182  ;;  %v2717_v50 = vld [vmem:[%s5656_s6 + $0xc0] sm:$0xff] }
 0x763   : > { %4194 = vrcp.f32 %v2448_v10  ;;  %v2446_v26 = vadd.f32 1.0, %v4183_v16  ;;  %v3919_v10 = vpack.c.bf16 %v2716_v3, %v2713_v62  ;;  %v2724_v16 = vld [vmem:[%s5656_s6 + $0xf8] sm:$0xff]  ;;  %v5767_v62 = vld [vmem:[#allocation54_spill] sm:$0xff] }
 0x765   : > { %4196 = vrcp.f32 %v2446_v26  ;;  %v2723_v26 = vld [vmem:[%s5656_s6 + $0xf0] sm:$0xff] }
 0x768   : > { %v4185_v17 = vpop.eup %4184 }
 0x769   : > { %v4187_v20 = vpop.eup %4186  ;;  %v2466_v36 = vmul.f32 %v4185_v17, %v4181_v12  ;;  %v3893_v12 = vpack.c.bf16 %v2720_v31, %v2717_v50  ;;  %v2727_v17 = vld [vmem:[%s5656_s6 + $0x110] sm:$0xff] }
 0x76a   : > { %v4189_v8 = vpop.eup %4188 }
 0x76b   : > { %v4191_v15 = vpop.eup %4190  ;;  %v2464_v13 = vmul.f32 %v4189_v8, %v5247_v7  ;;  %v2722_v8 = vld [vmem:[%s5656_s6 + $0xe8] sm:$0xff] }
 0x76c   : > { %v4193_v34 = vpop.eup %4192  ;;  %v2449_v27 = vadd.f32 1.0, %v4191_v15  ;;  %v2726_v15 = vld [vmem:[%s5656_s6 + $0x108] sm:$0xff] }
 0x76d   : > { %v5297_v38 = vadd.f32 %v2466_v36, %v2464_v13  ;;  %v2467_v53 = vmul.f32 %v4193_v34, %v4187_v20  ;;  %v4195_v18 = vpop.eup %4194  ;;  %v2719_v20 = vld [vmem:[%s5656_s6 + $0xd0] sm:$0xff]  ;;  %v3895_v36 = vpack.c.bf16 %v2727_v17, %v2724_v16  ;;  %v3897_v34 = vpack.c.bf16 %v2726_v15, %v2723_v26 }
 0x76e   : > { %v2465_v56 = vmul.f32 %v4195_v18, %v5251_v45  ;;  %v2694_v45 = vld [vmem:[%s5656_s6 + $0x8] sm:$0xff]  ;;  %v3923_v13 = vpack.c.bf16 %v2722_v8, %v2719_v20  ;;  %v2733_v18 = vld [vmem:[%s5656_s6 + $0x140] sm:$0xff] }
 0x76f   : > { %4198 = vtanh.f32 %v5297_v38  ;;  %v4197_v44 = vpop.eup %4196  ;;  %v3875_v30 = vpack.c.bf16 %v2697_v39, %v2694_v45  ;;  %v2739_v45 = vld [vmem:[%s5656_s6 + $0x170] sm:$0xff] }
 0x770   : > { %v5301_v63 = vadd.f32 %v2467_v53, %v2465_v56  ;;  %4200 = vrcp.f32 %v2449_v27  ;;  %v2730_v53 = vld [vmem:[%s5656_s6 + $0x128] sm:$0xff]  ;;  %v2725_v27 = vld [vmem:[%s5656_s6 + $0x100] sm:$0xff]  ;;  %v2731_v39 = vld [vmem:[%s5656_s6 + $0x130] sm:$0xff] }
 0x771   : > { %3876 = vmatprep.subr.bf16.mxu0 %v3875_v30  ;;  %v3899_v56 = vpack.c.bf16 %v2733_v18, %v2730_v53  ;;  %v3931_v33 = vpack.c.bf16 %v2734_v19, %v2731_v39 }
 0x772   : > { %4202 = vtanh.f32 %v5301_v63 }
 0x779   : > { %v4199_v0 = vpop.eup %4198 }
 0x77a   : > { %v2472_v4 = vmul.f32 %v4199_v0, %v4197_v44  ;;  %v4201_v7 = vpop.eup %4200  ;;  %v2728_v44 = vld [vmem:[%s5656_s6 + $0x118] sm:$0xff]  ;;  %v2729_v0 = vld [vmem:[%s5656_s6 + $0x120] sm:$0xff] }
 0x77c   : > { %2548 = vmatmul.mubr.f32.vlgmr.msra.gmra.mrb[60].mxu0 %v2472_v4  ;;  %2625 = vmatmul.mubr.f32.vlgmr.msra.gmra.mrb[60].mxu1 %v2472_v4  ;;  %v4203_v51 = vpop.eup %4202  ;;  %v2732_v4 = vld [vmem:[%s5656_s6 + $0x138] sm:$0xff] }
 0x77d   : > { %2553 = vmatprep.mubr.f32.mxu0 %v5717_v6  ;;  %2630 = vmatprep.mubr.f32.mxu1 %v5717_v6  ;;  %v2473_v54 = vmul.f32 %v4203_v51, %v4201_v7  ;;  %v3927_v7 = vpack.c.bf16 %v2728_v44, %v2725_v27  ;;  %v3901_v51 = vpack.c.bf16 %v2732_v4, %v2729_v0 }
 0x77e   : > { %3878 = vmatpush1.bf16.msra.mxu0 %v3877_v29  ;;  %3910 = vmatpush3.bf16.msra.mxu1 %v3907_v55  ;;  %v2738_v29 = vld [vmem:[%s5656_s6 + $0x168] sm:$0xff]  ;;  %v5760_v55 = vld [vmem:[#allocation47_spill] sm:$0xff] }
 0x77f   : > { %3880 = vmatprep.subr.bf16.mxu0 %v3879_v42  ;;  %3912 = vmatprep.subr.bf16.mxu1 %v3911_v22  ;;  %v3905_v37 = vpack.c.bf16 %v2738_v29, %v2735_v23  ;;  %v2740_v42 = vld [vmem:[%s5656_s6 + $0x178] sm:$0xff] }
 0x780   : > { %2554 = vmatmul.mubr.f32.gmra.mrb[62].mxu0 %v2473_v54  ;;  %2631 = vmatmul.mubr.f32.gmra.mrb[62].mxu1 %v2473_v54  ;;  %v2736_v54 = vld [vmem:[%s5656_s6 + $0x158] sm:$0xff]  ;;  %v3935_v46 = vpack.c.bf16 %v2740_v42, %v2737_v40  ;;  %v2741_v42 = vld [vmem:[%s5657_s7] sm:$0x7] }
 0x781   : > { %2822 = vmatprep.mubr.f32.mxu0 %v5717_v6  ;;  %v3903_v30 = vpack.c.bf16 %v2739_v45, %v2736_v54 }
 0x782   : > { %3882 = vmatpush1.bf16.msra.mxu0 %v3881_v59  ;;  %3914 = vmatpush3.bf16.msra.mxu1 %v3911_v22 }
 0x783   : > { %3884 = vmatprep.subr.bf16.mxu0 %v3883_v9  ;;  %3916 = vmatprep.subr.bf16.mxu1 %v3915_v61 }
 0x786   : > { %3886 = vmatpush1.bf16.msra.mxu0 %v3885_v28  ;;  %3918 = vmatpush3.bf16.msra.mxu1 %v3915_v61 }
 0x787   : > { %3888 = vmatprep.subr.bf16.mxu0 %v3887_v48  ;;  %3920 = vmatprep.subr.bf16.mxu1 %v3919_v10  ;;  %v5764_v48 = vld [vmem:[#allocation51_spill] sm:$0xff] }
 0x78a   : > { %3890 = vmatpush1.bf16.msra.mxu0 %v3889_v2  ;;  %3922 = vmatpush3.bf16.msra.mxu1 %v3919_v10 }
 0x78b   : > { %3892 = vmatprep.subr.bf16.mxu0 %v3891_v32  ;;  %3924 = vmatprep.subr.bf16.mxu1 %v3923_v13 }
 0x78e   : > { %3894 = vmatpush1.bf16.msra.mxu0 %v3893_v12  ;;  %3926 = vmatpush3.bf16.msra.mxu1 %v3923_v13 }
 0x78f   : > { %3896 = vmatprep.subr.bf16.mxu0 %v3895_v36  ;;  %3928 = vmatprep.subr.bf16.mxu1 %v3927_v7 }
 0x792   : > { %3898 = vmatpush1.bf16.msra.mxu0 %v3897_v34  ;;  %3930 = vmatpush3.bf16.msra.mxu1 %v3927_v7 }
 0x793   : > { %3900 = vmatprep.subr.bf16.mxu0 %v3899_v56  ;;  %3932 = vmatprep.subr.bf16.mxu1 %v3931_v33 }
 0x796   : > { %3902 = vmatpush1.bf16.msra.mxu0 %v3901_v51  ;;  %3934 = vmatpush3.bf16.msra.mxu1 %v3931_v33 }
 0x797   : > { %3904 = vmatprep.subr.bf16.mxu0 %v3903_v30  ;;  %3936 = vmatprep.subr.bf16.mxu1 %v3935_v46 }
 0x79a   : > { %3906 = vmatpush1.bf16.msra.mxu0 %v3905_v37  ;;  %3938 = vmatpush3.bf16.msra.mxu1 %v3935_v46 }
 0x84f   : > { %v2549_v47 = vpop.f32.mrb[60].mxu0  ;;  %v2626_v52 = vpop.f32.mrb[60].mxu1 }
 0x850   : > { %v2637_v59 = vadd.f32 %v2549_v47, %v5760_v55  ;;  %v2639_v1 = vadd.f32 %v2626_v52, %v5761_v60  ;;  %v2551_v5 = vpop.f32.mrb[61].mxu0  ;;  %v2628_v9 = vpop.f32.mrb[61].mxu1 }
 0x851   : > { %v2638_v14 = vadd.f32 %v2551_v5, %v5762_v11  ;;  %v2640_v22 = vadd.f32 %v2628_v9, %v5763_v21 }
 0x852   : > { %v3301_v28 = vmul.f32 -1.442695, %v2637_v59  ;;  %v3303_v31 = vmul.f32 -1.442695, %v2639_v1 }
 0x853   : > { %v3302_v35 = vmul.f32 -1.442695, %v2638_v14  ;;  %v2555_v41 = vpop.f32.mrb[62].mxu0  ;;  %v2632_v43 = vpop.f32.mrb[62].mxu1 }
 0x854   : > { %4204 = vpow2.f32 %v3301_v28  ;;  %v2641_v49 = vadd.f32 %v2555_v41, %v5764_v48  ;;  %v2643_v58 = vadd.f32 %v2632_v43, %v5765_v57  ;;  %v2557_v61 = vpop.f32.mrb[63].mxu0  ;;  %v2634_v2 = vpop.f32.mrb[63].mxu1 }
 0x855   : > { %v2642_v25 = vadd.f32 %v2557_v61, %v5766_v24  ;;  %v2644_v32 = vadd.f32 %v2634_v2, %v5767_v62  ;;  %4206 = vpow2.f32 %v3302_v35 }
 0x856   : > { %v3304_v3 = vmul.f32 -1.442695, %v2641_v49  ;;  %v3306_v17 = vmul.f32 -1.442695, %v2643_v58 }
 0x857   : > { %v3305_v50 = vmul.f32 -1.442695, %v2642_v25 }
 0x858   : > { %4208 = vpow2.f32 %v3304_v3 }
 0x859   : > { %4210 = vpow2.f32 %v3305_v50 }
 0x85a   : > { %4212 = vtanh.f32 %v2640_v22 }
 0x85b   : > { %4214 = vpow2.f32 %v3303_v31 }
 0x85e   : > { %v4205_v10 = vpop.eup %4204 }
 0x85f   : > { %v2663_v12 = vadd.f32 1.0, %v4205_v10  ;;  %v4207_v16 = vpop.eup %4206 }
 0x860   : > { %v2664_v20 = vadd.f32 1.0, %v4207_v16 }
 0x861   : > { %4216 = vrcp.f32 %v2663_v12 }
 0x862   : > { %v4209_v36 = vpop.eup %4208  ;;  %4218 = vtanh.f32 %v2644_v32 }
 0x863   : > { %4220 = vrcp.f32 %v2664_v20  ;;  %v2666_v8 = vadd.f32 1.0, %v4209_v36  ;;  %v4211_v26 = vpop.eup %4210 }
 0x864   : > { %4222 = vpow2.f32 %v3306_v17  ;;  %v2667_v15 = vadd.f32 1.0, %v4211_v26  ;;  %v4213_v13 = vpop.eup %4212 }
 0x865   : > { %4224 = vrcp.f32 %v2666_v8  ;;  %v4215_v34 = vpop.eup %4214 }
 0x866   : > { %4226 = vrcp.f32 %v2667_v15  ;;  %v2665_v44 = vadd.f32 1.0, %v4215_v34 }
 0x868   : > { %4228 = vrcp.f32 %v2665_v44 }
 0x86b   : > { %v4217_v53 = vpop.eup %4216 }
 0x86c   : > { %v4219_v18 = vpop.eup %4218  ;;  %v2685_v27 = vmul.f32 %v4217_v53, %v4213_v13 }
 0x86d   : > { %v4221_v56 = vpop.eup %4220 }
 0x86e   : > { %v4223_v0 = vpop.eup %4222  ;;  %v2683_v4 = vmul.f32 %v4221_v56, %v5297_v38 }
 0x86f   : > { %v4225_v7 = vpop.eup %4224  ;;  %v2668_v39 = vadd.f32 1.0, %v4223_v0 }
 0x870   : > { %v2687_v51 = vadd.f32 %v2685_v27, %v2683_v4  ;;  %v2686_v54 = vmul.f32 %v4225_v7, %v4219_v18  ;;  %v4227_v45 = vpop.eup %4226 }
 0x871   : > { %v2684_v30 = vmul.f32 %v4227_v45, %v5301_v63  ;;  %v5768_v63 = vld [vmem:[#allocation4_spill] sm:$0xff] }
 0x872   : > { %4230 = vtanh.f32 %v2687_v51  ;;  %v4229_v23 = vpop.eup %4228  ;;  %v5769_v46 = vsub.s32 0, %v5768_v63  ;;  %v5770_v52 = vsub.s32 1, %v5768_v63 }
 0x873   : > { %v2688_v19 = vadd.f32 %v2686_v54, %v2684_v30  ;;  %4232 = vrcp.f32 %v2668_v39 }
 0x874   : > { %v2746_v47 = vrot.slane %v2741_v42, %v5769_v46  ;;  %v2750_v55 = vrot.slane %v2741_v42, %v5770_v52 }
 0x875   : > { %4234 = vtanh.f32 %v2688_v19 }
 0x87c   : > { %v4231_v29 = vpop.eup %4230 }
 0x87d   : > { %v2691_v33 = vmul.f32 %v4231_v29, %v4229_v23  ;;  %v4233_v37 = vpop.eup %4232 }
 0x87f   : > { %2823 = vmatmul.mubr.f32.vlgmr.msra.gmra.mrb[64].mxu0 %v2691_v33  ;;  %3360 = vmatprep.mubr.f32.mxu1 %v2691_v33  ;;  %v4235_v40 = vpop.eup %4234 }
 0x880   : > { %2828 = vmatprep.mubr.f32.mxu0 %v5717_v6  ;;  %v2692_v38 = vmul.f32 %v4235_v40, %v4233_v37  ;;  %v5771_v6 = vsub.s32 2, %v5768_v63 }
 0x882   : > { %3361 = vmatmul.mubr.f32.vlgmr.msra.gmra.mrb[64].mxu1 %v2692_v38  ;;  %v2754_v5 = vrot.slane %v2741_v42, %v5771_v6 }
 0x883   : > { %2829 = vmatmul.mubr.f32.gmra.mrb[66].mxu0 %v2692_v38 }
 0x952   : > { %v2824_v59 = vpop.f32.mrb[64].mxu0 }
 0x953   : > { %v5469_v60 = vadd.f32 %v2824_v59, %v2746_v47  ;;  %v2826_v1 = vpop.f32.mrb[65].mxu0 }
 0x954   : > { %v5473_v9 = vadd.f32 %v2826_v1, %v2750_v55 }
 0x955   : > { %v2911_v11 = vsel %vm2910_vm1, %v5469_v60, 0.0  ;;  %v2918_v14 = vrot.slane %v5469_v60, 6  ;;  %v2935_v21 = vrot.slane %v5469_v60, 2  ;;  %v3362_v41 = vpop.f32.mrb[64].mxu1  ;;  %v2927_v43 = vrot.slane %v5469_v60, 4 }
 0x956   : > { %v2912_v22 = vrot.slane %v5473_v9, 7  ;;  %v2921_v28 = vrot.slane %v5473_v9, 5  ;;  %v2830_v35 = vpop.f32.mrb[66].mxu0  ;;  %v2937_v48 = vrot.slane %v5473_v9, 1  ;;  %v5485_v57 = vadd.f32 %v3362_v41, %v2754_v5  ;;  %v2901_v61 = vpop.f32.mrb[65].mxu1 }
 0x957   : > { %v5483_v49 = vadd.f32 %v2830_v35, %v2746_v47  ;;  %v2832_v58 = vpop.f32.mrb[67].mxu0  ;;  %v2930_v2 = vrot.slane %v5473_v9, 3  ;;  %v2902_v32 = vadd.f32 %v2901_v61, %v2754_v5 }
 0x958   : > { %v2914_v24 = vsel %vm2913_vm2, %v2912_v22, %v2911_v11  ;;  %v2944_v25 = vsel %vm2910_vm1, %v2921_v28, 0.0  ;;  %v5492_v62 = vadd.f32 %v2832_v58, %v2750_v55  ;;  %v2967_v31 = vrot.slane %v5485_v57, 2 }
 0x959   : > { %v2952_v3 = vsel %vm2910_vm1, %v5483_v49, 0.0  ;;  %v2969_v50 = vrot.slane %v5483_v49, 2  ;;  %v2955_v10 = vrot.slane %v5485_v57, 6  ;;  %v2915_v20 = vrot.slane %v2902_v32, 6 }
 0x95a   : > { %v2953_v12 = vrot.slane %v5492_v62, 7  ;;  %v2959_v16 = vrot.slane %v5492_v62, 5  ;;  %v2971_v17 = vrot.slane %v5492_v62, 1  ;;  %v2968_v36 = vsel %vm2910_vm1, %v2967_v31, 0.0 }
 0x95b   : > { %v2933_v8 = vrot.slane %v2902_v32, 2  ;;  %v2924_v26 = vrot.slane %v2902_v32, 4  ;;  %v2957_v15 = vrot.slane %v5483_v49, 6  ;;  %v2917_v53 = vsel %vm2916_vm3, %v2915_v20, %v2914_v24 }
 0x95c   : > { %v2954_v13 = vsel %vm2913_vm2, %v2953_v12, %v2952_v3  ;;  %v2978_v34 = vsel %vm2910_vm1, %v2959_v16, 0.0  ;;  %v2970_v18 = vsel %vm2913_vm2, %v2969_v50, %v2968_v36  ;;  %v2920_v56 = vsel %vm2919_vm4, %v2918_v14, %v2917_v53 }
 0x95d   : > { %v2934_v27 = vsel %vm2910_vm1, %v2933_v8, 0.0  ;;  %v2972_v44 = vsel %vm2916_vm3, %v2971_v17, %v2970_v18  ;;  %v2956_v0 = vsel %vm2916_vm3, %v2955_v10, %v2954_v13  ;;  %v2923_v4 = vsel %vm2922_vm5, %v2921_v28, %v2920_v56 }
 0x95e   : > { %v2973_v7 = vsel %vm2919_vm4, %v5485_v57, %v2972_v44  ;;  %v2958_v51 = vsel %vm2919_vm4, %v2957_v15, %v2956_v0  ;;  %v2961_v54 = vrot.slane %v5485_v57, 4  ;;  %v2926_v45 = vsel %vm2925_vm6, %v2924_v26, %v2923_v4 }
 0x95f   : > { %v2974_v39 = vsel %vm2922_vm5, %v5483_v49, %v2973_v7  ;;  %v2960_v30 = vsel %vm2922_vm5, %v2959_v16, %v2958_v51  ;;  %v2963_v19 = vrot.slane %v5483_v49, 4  ;;  %v2929_v23 = vsel %vm2928_vm7, %v2927_v43, %v2926_v45 }
 0x960   : > { %v2975_v29 = vsel %vm2925_vm6, %v2953_v12, %v2974_v39  ;;  %v2962_v33 = vsel %vm2925_vm6, %v2961_v54, %v2960_v30  ;;  %v2965_v37 = vrot.slane %v5492_v62, 3  ;;  %v2932_v40 = vsel %vm2931_vm8, %v2930_v2, %v2929_v23 }
 0x961   : > { %v2976_v38 = vsel %vm2928_vm7, %v2955_v10, %v2975_v29  ;;  %v2964_v42 = vsel %vm2928_vm7, %v2963_v19, %v2962_v33  ;;  %v2936_v63 = vsel %vm2913_vm2, %v2935_v21, %v2934_v27  ;;  %2986 = vmax.xlane.f32.xlu0 %v2932_v40  ;;  %v2945_v55 = vsel %vm2913_vm2, %v2924_v26, %v2944_v25 }
 0x962   : > { %v2977_v46 = vsel %vm2931_vm8, %v2957_v15, %v2976_v38  ;;  %v2966_v47 = vsel %vm2931_vm8, %v2965_v37, %v2964_v42  ;;  %v2938_v52 = vsel %vm2916_vm3, %v2937_v48, %v2936_v63  ;;  %v2946_v1 = vsel %vm2916_vm3, %v2927_v43, %v2945_v55 }
 0x963   : > { %2994 = vmax.xlane.f32.xlu1 %v2977_v46  ;;  %v2939_v59 = vsel %vm2919_vm4, %v2902_v32, %v2938_v52  ;;  %v2979_v6 = vsel %vm2913_vm2, %v2961_v54, %v2978_v34  ;;  %v2947_v11 = vsel %vm2919_vm4, %v2930_v2, %v2946_v1 }
 0x964   : > { %v2940_v5 = vsel %vm2922_vm5, %v5469_v60, %v2939_v59  ;;  %v2980_v28 = vsel %vm2916_vm3, %v2963_v19, %v2979_v6  ;;  %v2948_v41 = vsel %vm2922_vm5, %v2933_v8, %v2947_v11 }
 0x965   : > { %v2941_v35 = vsel %vm2925_vm6, %v2912_v22, %v2940_v5  ;;  %v2981_v49 = vsel %vm2919_vm4, %v2965_v37, %v2980_v28  ;;  %2992 = vmax.xlane.f32.xlu0 %v2966_v47  ;;  %v2949_v58 = vsel %vm2925_vm6, %v2935_v21, %v2948_v41 }
 0x966   : > { %v2942_v43 = vsel %vm2928_vm7, %v2915_v20, %v2941_v35  ;;  %v2982_v61 = vsel %vm2922_vm5, %v2967_v31, %v2981_v49  ;;  %v2950_v22 = vsel %vm2928_vm7, %v2937_v48, %v2949_v58 }
 0x967   : > { %v2943_v2 = vsel %vm2931_vm8, %v2918_v14, %v2942_v43  ;;  %v2983_v24 = vsel %vm2925_vm6, %v2969_v50, %v2982_v61  ;;  %v2951_v25 = vsel %vm2931_vm8, %v2902_v32, %v2950_v22 }
 0x968   : > { %2988 = vmax.xlane.f32.xlu1 %v2943_v2  ;;  %v2984_v62 = vsel %vm2928_vm7, %v2971_v17, %v2983_v24 }
 0x969   : > { %v2985_v21 = vsel %vm2931_vm8, %v5485_v57, %v2984_v62  ;;  %2990 = vmax.xlane.f32.xlu0 %v2951_v25 }
 0x96c   : > { %2996 = vmax.xlane.f32.xlu1 %v2985_v21 }
 0x9ee   : > { %v2987_v3 = vpop.xlane.xlu0 %2986 }
 0x9ef   : > { %v2998_v60 = vsub.f32 %v2932_v40, %v2987_v3 }
 0x9f0   : > { %v2995_v31 = vpop.xlane.xlu1 %2994 }
 0x9f1   : > { %v3004_v14 = vmul.f32 1.442695, %v2998_v60  ;;  %v5568_v10 = vsub.f32 %v2977_v46, %v2995_v31 }
 0x9f2   : > { %v2993_v9 = vpop.xlane.xlu0 %2992 }
 0x9f3   : > { %4236 = vpow2.f32 %v3004_v14  ;;  %v3001_v48 = vsub.f32 %v2966_v47, %v2993_v9  ;;  %v3012_v32 = vmul.f32 1.442695, %v5568_v10 }
 0x9f5   : > { %v2989_v50 = vpop.xlane.xlu1 %2988  ;;  %v3010_v12 = vmul.f32 1.442695, %v3001_v48 }
 0x9f6   : > { %v2999_v16 = vsub.f32 %v2943_v2, %v2989_v50  ;;  %v2991_v17 = vpop.xlane.xlu0 %2990 }
 0x9f7   : > { %4238 = vpow2.f32 %v3010_v12  ;;  %v5571_v57 = vsub.f32 %v2951_v25, %v2991_v17 }
 0x9f8   : > { %v3006_v20 = vmul.f32 1.442695, %v2999_v16 }
 0x9f9   : > { %v2997_v36 = vpop.xlane.xlu1 %2996  ;;  %v3008_v8 = vmul.f32 1.442695, %v5571_v57 }
 0x9fa   : > { %4240 = vpow2.f32 %v3006_v20  ;;  %v5574_v26 = vsub.f32 %v2985_v21, %v2997_v36 }
 0x9fb   : > { %4242 = vpow2.f32 %v3012_v32 }
 0x9fc   : > { %4244 = vpow2.f32 %v3008_v8  ;;  %v3014_v15 = vmul.f32 1.442695, %v5574_v26 }
 0x9fd   : > { %v4237_v13 = vpop.eup %4236 }
 0x9fe   : > { %3016 = vadd.xlane.f32.xlu0 %v4237_v13  ;;  %4246 = vpow2.f32 %v3014_v15 }
 0xa01   : > { %v4239_v34 = vpop.eup %4238 }
 0xa02   : > { %3022 = vadd.xlane.f32.xlu1 %v4239_v34 }
 0xa04   : > { %v4241_v53 = vpop.eup %4240 }
 0xa05   : > { %v4243_v18 = vpop.eup %4242  ;;  %3018 = vadd.xlane.f32.xlu0 %v4241_v53 }
 0xa06   : > { %v4245_v27 = vpop.eup %4244  ;;  %3024 = vadd.xlane.f32.xlu1 %v4243_v18 }
 0xa08   : > { %v4247_v56 = vpop.eup %4246 }
 0xa09   : > { %3020 = vadd.xlane.f32.xlu0 %v4245_v27 }
 0xa0a   : > { %3026 = vadd.xlane.f32.xlu1 %v4247_v56 }
 0xa8b   : > { %v3017_v44 = vpop.xlane.xlu0 %3016 }
 0xa8c   : > { %4248 = vlog2.f32 %v3017_v44 }
 0xa8f   : > { %v3023_v0 = vpop.xlane.xlu1 %3022 }
 0xa90   : > { %4250 = vlog2.f32 %v3023_v0 }
 0xa92   : > { %v3019_v4 = vpop.xlane.xlu0 %3018 }
 0xa93   : > { %4252 = vlog2.f32 %v3019_v4  ;;  %v3025_v7 = vpop.xlane.xlu1 %3024 }
 0xa94   : > { %4254 = vlog2.f32 %v3025_v7 }
 0xa96   : > { %v3021_v51 = vpop.xlane.xlu0 %3020  ;;  %v4249_v54 = vpop.eup %4248 }
 0xa97   : > { %v3029_v45 = vmul.f32 0.6931472, %v4249_v54  ;;  %v3027_v39 = vpop.xlane.xlu1 %3026  ;;  %4256 = vlog2.f32 %v3021_v51 }
 0xa98   : > { %4258 = vlog2.f32 %v3027_v39 }
 0xa99   : > { %v3040_v30 = vsub.f32 %v2998_v60, %v3029_v45 }
 0xa9a   : > { %v4251_v19 = vpop.eup %4250 }
 0xa9b   : > { %v3046_v23 = vsel %vm2910_vm1, %v3040_v30, 0.0  ;;  %v3047_v29 = vrot.slane %v3040_v30, 2  ;;  %v3060_v33 = vrot.slane %v3040_v30, 1  ;;  %v3062_v40 = vrot.slane %v3040_v30, 3 }
 0xa9c   : > { %v3035_v38 = vmul.f32 0.6931472, %v4251_v19  ;;  %v3049_v42 = vrot.slane %v3040_v30, 4  ;;  %v3064_v5 = vrot.slane %v3040_v30, 5 }
 0xa9d   : > { %v4253_v37 = vpop.eup %4252  ;;  %v3061_v63 = vsel %vm2910_vm1, %v3060_v33, 0.0  ;;  %v3048_v47 = vsel %vm2913_vm2, %v3047_v29, %v3046_v23  ;;  %v3076_v52 = vsel %vm2910_vm1, %v3047_v29, 0.0 }
 0xa9e   : > { %v3031_v46 = vmul.f32 0.6931472, %v4253_v37  ;;  %v3043_v55 = vsub.f32 %v3001_v48, %v3035_v38  ;;  %v4255_v59 = vpop.eup %4254  ;;  %v3063_v6 = vsel %vm2913_vm2, %v3062_v40, %v3061_v63  ;;  %v3077_v35 = vsel %vm2913_vm2, %v3049_v42, %v3076_v52 }
 0xa9f   : > { %v3050_v49 = vsel %vm2916_vm3, %v3049_v42, %v3048_v47  ;;  %v3037_v24 = vmul.f32 0.6931472, %v4255_v59  ;;  %v3065_v62 = vsel %vm2916_vm3, %v3064_v5, %v3063_v6 }
 0xaa0   : > { %v3041_v1 = vsub.f32 %v2999_v16, %v3031_v46  ;;  %v3085_v11 = vrot.slane %v3043_v55, 2  ;;  %v3098_v28 = vrot.slane %v3043_v55, 1  ;;  %v3100_v41 = vrot.slane %v3043_v55, 3 }
 0xaa1   : > { %v4257_v58 = vpop.eup %4256  ;;  %v3084_v61 = vsel %vm2910_vm1, %v3043_v55, 0.0  ;;  %v3087_v21 = vrot.slane %v3043_v55, 4  ;;  %v3102_v3 = vrot.slane %v3043_v55, 5  ;;  %v3044_v20 = vsub.f32 %v5568_v10, %v3037_v24 }
 0xaa2   : > { %v3051_v43 = vrot.slane %v3041_v1, 6  ;;  %v3099_v2 = vsel %vm2910_vm1, %v3098_v28, 0.0  ;;  %v3066_v22 = vrot.slane %v3041_v1, 7  ;;  %v4259_v25 = vpop.eup %4258  ;;  %v3114_v14 = vsel %vm2910_vm1, %v3085_v11, 0.0 }
 0xaa3   : > { %v3101_v31 = vsel %vm2913_vm2, %v3100_v41, %v3099_v2  ;;  %v3068_v9 = vrot.slane %v3041_v1, 1  ;;  %v3086_v50 = vsel %vm2913_vm2, %v3085_v11, %v3084_v61  ;;  %v3054_v16 = vrot.slane %v3041_v1, 2 }
 0xaa4   : > { %v3052_v60 = vsel %vm2919_vm4, %v3051_v43, %v3050_v49  ;;  %v3078_v48 = vsel %vm2916_vm3, %v3051_v43, %v3077_v35  ;;  %v3067_v32 = vsel %vm2919_vm4, %v3066_v22, %v3065_v62  ;;  %v3033_v36 = vmul.f32 0.6931472, %v4257_v58 }
 0xaa5   : > { %v3053_v12 = vsel %vm2922_vm5, %v3041_v1, %v3052_v60  ;;  %v3079_v17 = vsel %vm2919_vm4, %v3041_v1, %v3078_v48  ;;  %v3039_v8 = vmul.f32 0.6931472, %v4259_v25  ;;  %v3103_v15 = vsel %vm2916_vm3, %v3102_v3, %v3101_v31 }
 0xaa6   : > { %v3115_v13 = vsel %vm2913_vm2, %v3087_v21, %v3114_v14  ;;  %v3055_v34 = vsel %vm2925_vm6, %v3054_v16, %v3053_v12  ;;  %v3069_v53 = vsel %vm2922_vm5, %v3068_v9, %v3067_v32  ;;  %v3089_v18 = vrot.slane %v3044_v20, 6 }
 0xaa7   : > { %v3104_v27 = vrot.slane %v3044_v20, 7  ;;  %v3080_v56 = vsel %vm2922_vm5, %v3054_v16, %v3079_v17  ;;  %v3088_v44 = vsel %vm2916_vm3, %v3087_v21, %v3086_v50  ;;  %v3092_v0 = vrot.slane %v3044_v20, 2 }
 0xaa8   : > { %v3042_v10 = vsub.f32 %v5571_v57, %v3033_v36  ;;  %v3090_v4 = vsel %vm2919_vm4, %v3089_v18, %v3088_v44  ;;  %v3106_v7 = vrot.slane %v3044_v20, 1  ;;  %v3116_v51 = vsel %vm2916_vm3, %v3089_v18, %v3115_v13 }
 0xaa9   : > { %v3045_v54 = vsub.f32 %v5574_v26, %v3039_v8  ;;  %v3091_v45 = vsel %vm2922_vm5, %v3044_v20, %v3090_v4  ;;  %v3105_v39 = vsel %vm2919_vm4, %v3104_v27, %v3103_v15  ;;  %v3117_v30 = vsel %vm2919_vm4, %v3044_v20, %v3116_v51 }
 0xaaa   : > { %v3056_v19 = vrot.slane %v3042_v10, 4  ;;  %v3093_v57 = vsel %vm2925_vm6, %v3092_v0, %v3091_v45  ;;  %v3118_v23 = vsel %vm2922_vm5, %v3092_v0, %v3117_v30  ;;  %v3058_v29 = vrot.slane %v3042_v10, 6 }
 0xaab   : > { %v3070_v33 = vrot.slane %v3042_v10, 3  ;;  %v3072_v37 = vrot.slane %v3042_v10, 5  ;;  %v3074_v40 = vrot.slane %v3042_v10, 7  ;;  %v3094_v47 = vrot.slane %v3045_v54, 4 }
 0xaac   : > { %v3057_v26 = vsel %vm2928_vm7, %v3056_v19, %v3055_v34  ;;  %v3081_v38 = vsel %vm2925_vm6, %v3056_v19, %v3080_v56  ;;  %v3096_v59 = vrot.slane %v3045_v54, 6  ;;  %v3108_v1 = vrot.slane %v3045_v54, 3 }
 0xaad   : > { %v3059_v42 = vsel %vm2931_vm8, %v3058_v29, %v3057_v26  ;;  %v3071_v63 = vsel %vm2925_vm6, %v3070_v33, %v3069_v53  ;;  %v3082_v46 = vsel %vm2928_vm7, %v3058_v29, %v3081_v38  ;;  %v3107_v6 = vsel %vm2922_vm5, %v3106_v7, %v3105_v39 }
 0xaae   : > { %v3073_v52 = vsel %vm2928_vm7, %v3072_v37, %v3071_v63  ;;  %v3083_v55 = vsel %vm2931_vm8, %v3042_v10, %v3082_v46  ;;  %3122 = vst [vmem:[%s5613_s29] sm:$0xff] %v3059_v42  ;;  %v3095_v11 = vsel %vm2928_vm7, %v3094_v47, %v3093_v57  ;;  %v3110_v28 = vrot.slane %v3045_v54, 5 }
 0xaaf   : > { %v3075_v5 = vsel %vm2931_vm8, %v3074_v40, %v3073_v52  ;;  %3124 = vst [vmem:[%s5613_s29 + $0x10] sm:$0xff] %v3083_v55  ;;  %v3097_v35 = vsel %vm2931_vm8, %v3096_v59, %v3095_v11  ;;  %v3109_v41 = vsel %vm2925_vm6, %v3108_v1, %v3107_v6  ;;  %v3112_v49 = vrot.slane %v3045_v54, 7 }
 0xab0   : > { %3123 = vst [vmem:[%s5613_s29 + $0x8] sm:$0xff] %v3075_v5  ;;  %v3119_v43 = vsel %vm2925_vm6, %v3094_v47, %v3118_v23  ;;  %v3111_v58 = vsel %vm2928_vm7, %v3110_v28, %v3109_v41  ;;  %3125 = vst [vmem:[%s5613_s29 + $0x18] sm:$0xff] %v3097_v35 }
 0xab1   : > { %v3120_v61 = vsel %vm2928_vm7, %v3096_v59, %v3119_v43  ;;  %v3113_v2 = vsel %vm2931_vm8, %v3112_v49, %v3111_v58 }
 0xab2   : > { %v3121_v22 = vsel %vm2931_vm8, %v3045_v54, %v3120_v61  ;;  %3126 = vst [vmem:[%s5613_s29 + $0x20] sm:$0xff] %v3113_v2 }
 0xab3   : > { %3127 = vst [vmem:[%s5613_s29 + $0x28] sm:$0xff] %v3121_v22 }
 0xab4 PF: > { %p15_p9 = scmp.ge.s32.totalorder %s4348_s9, 4   ;;  %s5772_s27 = smov %s4278_s28 }
 0xab5   : > { %s5773_s28 = smov %s4357_s12  ;;  %s5774_s29 = smov %s4348_s9 }
 0xab6   :  { %17 = sbr.rel (!%p15_p9) target bundleno = 2 (0x2), region = 141 }

</bundles_post_ra>
